<compile_context>
chip_gen: v5e
topology: v5e:2x2
jax: 0.10.0
libtpu: 0.0.40
codegen_flags: <defaults>
</compile_context>

<pallas_src>
import functools

import numpy as np
import jax
import jax.numpy as jnp
from jax.experimental import pallas as pl
from jax.experimental.pallas import tpu as pltpu

# ----------------------------- config (small synthetic sizes) ----------------
B = 2                      # batch
T = 8                      # seq len
HIDDEN = 32                # hidden_size
NUM_HEADS = 4              # num_attention_heads
NUM_KV_HEADS = 2           # num_key_value_heads
HEAD_DIM = 8               # head_dim
N_REP = NUM_HEADS // NUM_KV_HEADS
INTERMEDIATE = 64          # intermediate_size
NUM_STATES = 4             # num_states (MoS gate)
SLIDING_WINDOW = 4         # sliding_window (group-local, flash_attn style)
RMS_EPS = 1e-6
ROPE_THETA = 10000.0
GATE_LOW_RANK = 16         # gate_low_rank_dim
GATE_LOGIT_NORMALIZER = 16.0
DTYPE = jnp.float32        # activation dtype
MXU_DTYPE = jnp.bfloat16   # dtype fed to the MXU (f32 accumulation)

QD = NUM_HEADS * HEAD_DIM        # 32
KD = NUM_KV_HEADS * HEAD_DIM     # 16
# wide fused projection columns:
#   boss q | boss q@R | boss k | boss k@R | boss v | main q | main k | main v
#   | folded low-rank gk | MoS gate logits
W_ALL_COLS = 3 * QD + 6 * KD + NUM_STATES   # 196


# ----------------------------- fused decoder-layer kernel --------------------
def _fused_layer_kernel(x_ref, cos_q_ref, sin_q_ref, cos_k_ref, sin_k_ref,
                        in_ln_ref, w_all_ref, gk_b_ref,
                        boss_wo_ref, main_wo_ref, g_norm_ref,
                        post_ln_ref, w_gu_ref, w_down_ref, o_ref,
                        *, eps, normalizer, num_states, num_heads,
                        num_kv_heads, head_dim, window, intermediate):
    t = x_ref.shape[0]
    d = head_dim
    n_rep = num_heads // num_kv_heads
    qd = num_heads * d
    kd = num_kv_heads * d
    scale = float(d) ** -0.5

    x = x_ref[...].astype(jnp.float32)

    # ---- input RMSNorm (f32) -------------------------------------------------
    var = jnp.mean(x * x, axis=-1, keepdims=True)
    xn = x * jax.lax.rsqrt(var + eps) * in_ln_ref[...].astype(jnp.float32)

    # ---- ONE wide fused projection matmul (bf16 in, f32 accumulate) ----------
    proj = jnp.dot(xn.astype(MXU_DTYPE), w_all_ref[...].astype(MXU_DTYPE),
                   preferred_element_type=jnp.float32)
    o0 = 0
    bq = proj[:, o0:o0 + qd]; o0 += qd           # boss q
    bqr = proj[:, o0:o0 + qd]; o0 += qd          # boss q @ rotate_half matrix
    bk = proj[:, o0:o0 + kd]; o0 += kd           # boss k
    bkr = proj[:, o0:o0 + kd]; o0 += kd          # boss k @ rotate_half matrix
    bv = proj[:, o0:o0 + kd]; o0 += kd           # boss v
    mq = proj[:, o0:o0 + qd]; o0 += qd           # main q
    mk = proj[:, o0:o0 + kd]; o0 += kd           # main k
    mv = proj[:, o0:o0 + kd]; o0 += kd           # main v
    gky = proj[:, o0:o0 + kd] + gk_b_ref[...].astype(jnp.float32); o0 += kd
    gl = proj[:, o0:o0 + num_states]             # MoS gate logits

    # ---- RoPE (rotate_half folded into *_rot weight columns -> pure VPU) -----
    bq = bq * cos_q_ref[...].astype(jnp.float32) + bqr * sin_q_ref[...].astype(jnp.float32)
    bk = bk * cos_k_ref[...].astype(jnp.float32) + bkr * sin_k_ref[...].astype(jnp.float32)

    # ---- MoS gate: out_weight = max(softmax(gl)) = 1/sum(exp(gl-max)),
    #      sid = argmax(gl) (first-max tie break, matching torch.max) ----------
    m = jnp.max(gl, axis=-1, keepdims=True)
    out_weight = 1.0 / jnp.sum(jnp.exp(gl - m), axis=-1, keepdims=True)    # (T,1)
    st_iota = jax.lax.broadcasted_iota(jnp.int32, (t, num_states), 1)
    sid = jnp.min(jnp.where(gl == m, st_iota, num_states),
                  axis=-1, keepdims=True)                                   # (T,1)

    # ---- boss branch: state-grouped causal sliding-window attention ----------
    # (T,T) mask / group-rank computed ONCE per batch, reused for every head.
    onehot = (jnp.broadcast_to(sid, (t, num_states)) == st_iota).astype(jnp.float32)
    same = jax.lax.dot_general(onehot, onehot, (((1,), (1,)), ((), ())),
                               preferred_element_type=jnp.float32) > 0.5
    pos_i = jax.lax.broadcasted_iota(jnp.int32, (t, t), 0)
    pos_j = jax.lax.broadcasted_iota(jnp.int32, (t, t), 1)
    causal = pos_j <= pos_i
    grp = jnp.logical_and(same, causal)
    grp_t = jnp.logical_and(same, pos_i <= pos_j)
    rank_i = jnp.sum(grp.astype(jnp.int32), axis=1, keepdims=True)          # (T,1)
    rank_j = jnp.sum(grp_t.astype(jnp.int32), axis=0, keepdims=True)        # (1,T)
    boss_mask = jnp.logical_and(grp, (rank_i - rank_j) <= window)

    # every query attends at least itself, so the dense softmax below is safe.
    # TODO(synk): switch to flash-style online softmax over KV tiles when T is
    # large (needed to fit v7x's 64 MiB VMEM at production sequence lengths).
    boss_heads = []
    for h in range(num_heads):
        kvh = h // n_rep
        qh = bq[:, h * d:(h + 1) * d]
        kh = bk[:, kvh * d:(kvh + 1) * d]
        vh = bv[:, kvh * d:(kvh + 1) * d]
        s = jax.lax.dot_general(qh.astype(MXU_DTYPE), kh.astype(MXU_DTYPE),
                                (((1,), (1,)), ((), ())),
                                preferred_element_type=jnp.float32) * scale
        s = jnp.where(boss_mask, s, -1e30)
        mrow = jnp.max(s, axis=-1, keepdims=True)
        p = jnp.exp(s - mrow)
        p = p * pl.reciprocal(jnp.sum(p, axis=-1, keepdims=True), approx=True)
        boss_heads.append(jnp.dot(p.astype(MXU_DTYPE), vh.astype(MXU_DTYPE),
                                  preferred_element_type=jnp.float32))
    boss_cat = jnp.concatenate(boss_heads, axis=-1)                          # (T,QD)
    boss_out = jnp.dot(boss_cat.astype(MXU_DTYPE), boss_wo_ref[...].astype(MXU_DTYPE),
                       preferred_element_type=jnp.float32)
    boss_out = boss_out * out_weight            # fused MoS out_weight scaling

    # ---- main branch: GLA in closed (chunk) form ------------------------------
    # relu feature map on q/k; gk = logsigmoid(gk_proj) / normalizer.
    qf = jnp.maximum(mq, 0.0)
    kf = jnp.maximum(mk, 0.0)
    z = jnp.exp(-jnp.abs(gky))
    gk = (jnp.minimum(gky, 0.0) - jnp.log(1.0 + z)) / normalizer

    # S_t = diag(exp(gk_t)) S_{t-1} + k_t^T v_t ;  o_t = scale * q_t S_t
    #   -> A[t,s] = <q_t*exp(G_t), k_s*exp(-G_s)> * scale,  G_t = cumsum(gk)
    # cumsum done with one lower-triangular MXU matmul (no sequential scan).
    # TODO(synk): chunk the sequence (<=64) for long T to keep exp(+-G) bounded
    # exactly as chunk_gla does.
    ltri = causal.astype(jnp.float32)
    G = jnp.dot(ltri, gk, preferred_element_type=jnp.float32)                # (T,KD)
    expG = jnp.exp(G)
    expnG = jnp.exp(-G)
    gnw = g_norm_ref[...].astype(jnp.float32)                                # (1,D)

    main_heads = []
    for h in range(num_heads):
        kvh = h // n_rep
        sl = slice(kvh * d, (kvh + 1) * d)
        qh = qf[:, h * d:(h + 1) * d] * expG[:, sl] * scale
        kh = kf[:, sl] * expnG[:, sl]
        vh = mv[:, sl]
        a = jax.lax.dot_general(qh.astype(MXU_DTYPE), kh.astype(MXU_DTYPE),
                                (((1,), (1,)), ((), ())),
                                preferred_element_type=jnp.float32)
        a = jnp.where(causal, a, 0.0)
        oh = jnp.dot(a.astype(MXU_DTYPE), vh.astype(MXU_DTYPE),
                     preferred_element_type=jnp.float32)                    # (T,D)
        # fused per-head g_norm (RMSNorm over head_dim)
        varh = jnp.mean(oh * oh, axis=-1, keepdims=True)
        main_heads.append(oh * jax.lax.rsqrt(varh + eps) * gnw)
    main_cat = jnp.concatenate(main_heads, axis=-1)                          # (T,QD)
    main_out = jnp.dot(main_cat.astype(MXU_DTYPE), main_wo_ref[...].astype(MXU_DTYPE),
                       preferred_element_type=jnp.float32)

    # ---- combine + post-attn RMSNorm + SwiGLU MLP + final residual -----------
    h_mid = x + main_out + boss_out
    var2 = jnp.mean(h_mid * h_mid, axis=-1, keepdims=True)
    y = h_mid * jax.lax.rsqrt(var2 + eps) * post_ln_ref[...].astype(jnp.float32)
    gu = jnp.dot(y.astype(MXU_DTYPE), w_gu_ref[...].astype(MXU_DTYPE),
                 preferred_element_type=jnp.float32)      # gate|up fused matmul
    g = gu[:, :intermediate]
    u = gu[:, intermediate:]
    silu = g * pl.reciprocal(1.0 + jnp.exp(-g), approx=True)
    mlp = jnp.dot((silu * u).astype(MXU_DTYPE), w_down_ref[...].astype(MXU_DTYPE),
                  preferred_element_type=jnp.float32)
    o_ref[...] = (h_mid + mlp).astype(o_ref.dtype)


# ----------------------------- wrapper ----------------------------------------
def _rotate_half_matrix(head_dim, n_heads):
    """Block-diagonal matrix R with  x @ R == rotate_half(x)  per head block."""
    half = head_dim // 2
    r = np.zeros((head_dim, head_dim), np.float32)
    r[np.arange(half) + half, np.arange(half)] = -1.0
    r[np.arange(half), np.arange(half) + half] = 1.0
    return jnp.asarray(np.kron(np.eye(n_heads, dtype=np.float32), r))


def boss_decoder_layer(params, hidden_states, position_ids):
    x2d = hidden_states.reshape(B * T, HIDDEN)

    # RoPE tables (tiny trig, per-head packed so the kernel stays lane-dense)
    inv_freq = 1.0 / (ROPE_THETA ** (jnp.arange(0, HEAD_DIM, 2, dtype=jnp.float32)
                                     / HEAD_DIM))
    freqs = position_ids.astype(jnp.float32)[:, :, None] * inv_freq[None, None, :]
    emb = jnp.concatenate([freqs, freqs], axis=-1)                  # [B, T, D]
    cos, sin = jnp.cos(emb), jnp.sin(emb)
    cos_q = jnp.tile(cos, (1, 1, NUM_HEADS)).reshape(B * T, QD).astype(DTYPE)
    sin_q = jnp.tile(sin, (1, 1, NUM_HEADS)).reshape(B * T, QD).astype(DTYPE)
    cos_k = jnp.tile(cos, (1, 1, NUM_KV_HEADS)).reshape(B * T, KD).astype(DTYPE)
    sin_k = jnp.tile(sin, (1, 1, NUM_KV_HEADS)).reshape(B * T, KD).astype(DTYPE)

    # Weight-only precompute: concatenate every projection (incl. RoPE-rotated
    # q/k columns, folded low-rank gk, MoS gate) into one wide MXU matmul.
    r_q = _rotate_half_matrix(HEAD_DIM, NUM_HEADS)
    r_k = _rotate_half_matrix(HEAD_DIM, NUM_KV_HEADS)
    w_all = jnp.concatenate([
        params["boss_q"], params["boss_q"] @ r_q,
        params["boss_k"], params["boss_k"] @ r_k,
        params["boss_v"],
        params["main_q"], params["main_k"], params["main_v"],
        params["gk_w1"] @ params["gk_w2"],
        params["gate_w"],
    ], axis=1)
    w_gu = jnp.concatenate([params["mlp_gate"], params["mlp_up"]], axis=1)

    l_aux = 0.0  # eval mode
    # TODO(synk): training-mode l_aux (one-hot load-balancing loss) and dropout
    # are not implemented (eval semantics).

    const = lambda b: (0, 0)          # weights: same block every grid step
    perb = lambda b: (b, 0)           # activations: one (T, ·) slab per batch

    out2d = pl.pallas_call(
        functools.partial(_fused_layer_kernel, eps=RMS_EPS,
                          normalizer=GATE_LOGIT_NORMALIZER,
                          num_states=NUM_STATES, num_heads=NUM_HEADS,
                          num_kv_heads=NUM_KV_HEADS, head_dim=HEAD_DIM,
                          window=SLIDING_WINDOW, intermediate=INTERMEDIATE),
        out_shape=jax.ShapeDtypeStruct((B * T, HIDDEN), DTYPE),
        grid=(B,),
        in_specs=[
            pl.BlockSpec((T, HIDDEN), perb),                 # x
            pl.BlockSpec((T, QD), perb),                     # cos_q
            pl.BlockSpec((T, QD), perb),                     # sin_q
            pl.BlockSpec((T, KD), perb),                     # cos_k
            pl.BlockSpec((T, KD), perb),                     # sin_k
            pl.BlockSpec((1, HIDDEN), const),                # input_layernorm w
            pl.BlockSpec((HIDDEN, W_ALL_COLS), const),       # fused projection w
            pl.BlockSpec((1, KD), const),                    # gk bias
            pl.BlockSpec((QD, HIDDEN), const),               # boss o_proj
            pl.BlockSpec((QD, HIDDEN), const),               # main o_proj
            pl.BlockSpec((1, HEAD_DIM), const),              # g_norm weight
            pl.BlockSpec((1, HIDDEN), const),                # post_attn ln w
            pl.BlockSpec((HIDDEN, 2 * INTERMEDIATE), const), # mlp gate|up
            pl.BlockSpec((INTERMEDIATE, HIDDEN), const),     # mlp down
        ],
        out_specs=pl.BlockSpec((T, HIDDEN), perb),
        compiler_params=pltpu.CompilerParams(dimension_semantics=("parallel",)),
    )(x2d, cos_q, sin_q, cos_k, sin_k,
      params["in_ln_w"].reshape(1, HIDDEN), w_all,
      params["gk_b2"].reshape(1, KD),
      params["boss_o"], params["main_o"],
      params["g_norm_w"].reshape(1, HEAD_DIM),
      params["post_ln_w"].reshape(1, HIDDEN),
      w_gu, params["mlp_down"])

    # TODO(synk): use_cache / past_key_value (boss KV + GLA recurrent state
    # cache) path not implemented.
    return out2d.reshape(B, T, HIDDEN), l_aux


# ----------------------------- params / main -----------------------------------
def init_params(key):
    keys = jax.random.split(key, 14)

    def w(k, shape, scale=0.08):
        return (jax.random.normal(k, shape, jnp.float32) * scale).astype(DTYPE)

    return {
        "in_ln_w": jnp.ones((HIDDEN,), DTYPE),
        "post_ln_w": jnp.ones((HIDDEN,), DTYPE),
        "g_norm_w": jnp.ones((HEAD_DIM,), DTYPE),
        "gate_w": w(keys[0], (HIDDEN, NUM_STATES)),
        "boss_q": w(keys[1], (HIDDEN, QD)),
        "boss_k": w(keys[2], (HIDDEN, KD)),
        "boss_v": w(keys[3], (HIDDEN, KD)),
        "boss_o": w(keys[4], (QD, HIDDEN)),
        "main_q": w(keys[5], (HIDDEN, QD)),
        "main_k": w(keys[6], (HIDDEN, KD)),
        "main_v": w(keys[7], (HIDDEN, KD)),
        "main_o": w(keys[8], (QD, HIDDEN)),
        "gk_w1": w(keys[9], (HIDDEN, GATE_LOW_RANK)),
        "gk_w2": w(keys[10], (GATE_LOW_RANK, KD)),
        "gk_b2": jnp.zeros((KD,), DTYPE),
        "mlp_gate": w(keys[11], (HIDDEN, INTERMEDIATE)),
        "mlp_up": w(keys[12], (HIDDEN, INTERMEDIATE)),
        "mlp_down": w(keys[13], (INTERMEDIATE, HIDDEN)),
    }


if __name__ == "__main__":
    key = jax.random.PRNGKey(0)
    pkey, xkey = jax.random.split(key)
    params = init_params(pkey)
    hidden_states = jax.random.normal(xkey, (B, T, HIDDEN), DTYPE)
    position_ids = jnp.broadcast_to(jnp.arange(T, dtype=jnp.int32)[None, :], (B, T))

    fwd = jax.jit(boss_decoder_layer)
    out, l_aux = fwd(params, hidden_states, position_ids)
    out = jax.block_until_ready(out)

    assert out.shape == (B, T, HIDDEN)
    assert bool(jnp.all(jnp.isfinite(out)))
    print("KERNEL_OK")
</pallas_src>

<mosaic_0001>
module attributes {stable_mosaic.version = 11 : i64} {
  func.func @_fused_layer_kernel(%arg0: i32, %arg1: memref<8x32xf32, #tpu.memory_space<vmem>>, %arg2: memref<8x32xf32, #tpu.memory_space<vmem>>, %arg3: memref<8x32xf32, #tpu.memory_space<vmem>>, %arg4: memref<8x16xf32, #tpu.memory_space<vmem>>, %arg5: memref<8x16xf32, #tpu.memory_space<vmem>>, %arg6: memref<1x32xf32, #tpu.memory_space<vmem>>, %arg7: memref<32x196xf32, #tpu.memory_space<vmem>>, %arg8: memref<1x16xf32, #tpu.memory_space<vmem>>, %arg9: memref<32x32xf32, #tpu.memory_space<vmem>>, %arg10: memref<32x32xf32, #tpu.memory_space<vmem>>, %arg11: memref<1x8xf32, #tpu.memory_space<vmem>>, %arg12: memref<1x32xf32, #tpu.memory_space<vmem>>, %arg13: memref<32x128xf32, #tpu.memory_space<vmem>>, %arg14: memref<64x32xf32, #tpu.memory_space<vmem>>, %arg15: memref<8x32xf32, #tpu.memory_space<vmem>>) attributes {dimension_semantics = [#tpu.dimension_semantics<parallel>], iteration_bounds = array<i64: 2>, scalar_prefetch = 0 : i64, scratch_operands = 0 : i64, tpu.core_type = #tpu.core_type<tc>, window_params = [{transform_indices = @transform_0, window_bounds = array<i64: 8, 32>}, {transform_indices = @transform_1, window_bounds = array<i64: 8, 32>}, {transform_indices = @transform_2, window_bounds = array<i64: 8, 32>}, {transform_indices = @transform_3, window_bounds = array<i64: 8, 16>}, {transform_indices = @transform_4, window_bounds = array<i64: 8, 16>}, {pipeline_mode = #tpu.pipeline_mode<synchronous>, transform_indices = @transform_5, window_bounds = array<i64: 1, 32>}, {pipeline_mode = #tpu.pipeline_mode<synchronous>, transform_indices = @transform_6, window_bounds = array<i64: 32, 196>}, {pipeline_mode = #tpu.pipeline_mode<synchronous>, transform_indices = @transform_7, window_bounds = array<i64: 1, 16>}, {pipeline_mode = #tpu.pipeline_mode<synchronous>, transform_indices = @transform_8, window_bounds = array<i64: 32, 32>}, {pipeline_mode = #tpu.pipeline_mode<synchronous>, transform_indices = @transform_9, window_bounds = array<i64: 32, 32>}, {pipeline_mode = #tpu.pipeline_mode<synchronous>, transform_indices = @transform_10, window_bounds = array<i64: 1, 8>}, {pipeline_mode = #tpu.pipeline_mode<synchronous>, transform_indices = @transform_11, window_bounds = array<i64: 1, 32>}, {pipeline_mode = #tpu.pipeline_mode<synchronous>, transform_indices = @transform_12, window_bounds = array<i64: 32, 128>}, {pipeline_mode = #tpu.pipeline_mode<synchronous>, transform_indices = @transform_13, window_bounds = array<i64: 64, 32>}, {transform_indices = @transform_14, window_bounds = array<i64: 8, 32>}]} {
    %c0 = arith.constant 0 : index
    %c0_0 = arith.constant 0 : index
    %0 = vector.load %arg1[%c0, %c0_0] : memref<8x32xf32, #tpu.memory_space<vmem>>, vector<8x32xf32>
    %1 = arith.mulf %0, %0 : vector<8x32xf32>
    %cst = arith.constant dense<0.000000e+00> : vector<8xf32>
    %2 = vector.multi_reduction <add>, %1, %cst [1] : vector<8x32xf32> to vector<8xf32>
    %3 = vector.shape_cast %2 : vector<8xf32> to vector<8x1xf32>
    %cst_1 = arith.constant 3.200000e+01 : f32
    %4 = vector.broadcast %cst_1 : f32 to vector<8x1xf32>
    %5 = arith.divf %3, %4 : vector<8x1xf32>
    %cst_2 = arith.constant 9.99999997E-7 : f32
    %6 = vector.broadcast %cst_2 : f32 to vector<8x1xf32>
    %7 = arith.addf %5, %6 : vector<8x1xf32>
    %8 = math.rsqrt %7 : vector<8x1xf32>
    %9 = vector.broadcast %8 : vector<8x1xf32> to vector<8x32xf32>
    %10 = arith.mulf %0, %9 : vector<8x32xf32>
    %c0_3 = arith.constant 0 : index
    %c0_4 = arith.constant 0 : index
    %11 = vector.load %arg6[%c0_3, %c0_4] : memref<1x32xf32, #tpu.memory_space<vmem>>, vector<1x32xf32>
    %12 = vector.broadcast %11 : vector<1x32xf32> to vector<8x32xf32>
    %13 = arith.mulf %10, %12 : vector<8x32xf32>
    %14 = arith.truncf %13 : vector<8x32xf32> to vector<8x32xbf16>
    %c0_5 = arith.constant 0 : index
    %c0_6 = arith.constant 0 : index
    %15 = vector.load %arg7[%c0_5, %c0_6] : memref<32x196xf32, #tpu.memory_space<vmem>>, vector<32x196xf32>
    %16 = arith.truncf %15 : vector<32x196xf32> to vector<32x196xbf16>
    %cst_7 = arith.constant dense<0.000000e+00> : vector<8x196xf32>
    %17 = tpu.matmul %14, %16, %cst_7 {dimension_numbers = #tpu.dot_dimension_numbers<[1], [0], [0], [1], [0, 0, 1, 1], [], []>} : vector<8x32xbf16>, vector<32x196xbf16>, vector<8x196xf32> -> vector<8x196xf32>
    %18 = vector.extract_strided_slice %17 {offsets = [0, 0], sizes = [8, 32], strides = [1, 1]} : vector<8x196xf32> to vector<8x32xf32>
    %19 = vector.extract_strided_slice %17 {offsets = [0, 32], sizes = [8, 32], strides = [1, 1]} : vector<8x196xf32> to vector<8x32xf32>
    %20 = vector.extract_strided_slice %17 {offsets = [0, 64], sizes = [8, 16], strides = [1, 1]} : vector<8x196xf32> to vector<8x16xf32>
    %21 = vector.extract_strided_slice %17 {offsets = [0, 80], sizes = [8, 16], strides = [1, 1]} : vector<8x196xf32> to vector<8x16xf32>
    %22 = vector.extract_strided_slice %17 {offsets = [0, 96], sizes = [8, 16], strides = [1, 1]} : vector<8x196xf32> to vector<8x16xf32>
    %23 = vector.extract_strided_slice %17 {offsets = [0, 112], sizes = [8, 32], strides = [1, 1]} : vector<8x196xf32> to vector<8x32xf32>
    %24 = vector.extract_strided_slice %17 {offsets = [0, 144], sizes = [8, 16], strides = [1, 1]} : vector<8x196xf32> to vector<8x16xf32>
    %25 = vector.extract_strided_slice %17 {offsets = [0, 160], sizes = [8, 16], strides = [1, 1]} : vector<8x196xf32> to vector<8x16xf32>
    %26 = vector.extract_strided_slice %17 {offsets = [0, 176], sizes = [8, 16], strides = [1, 1]} : vector<8x196xf32> to vector<8x16xf32>
    %c0_8 = arith.constant 0 : index
    %c0_9 = arith.constant 0 : index
    %27 = vector.load %arg8[%c0_8, %c0_9] : memref<1x16xf32, #tpu.memory_space<vmem>>, vector<1x16xf32>
    %28 = vector.broadcast %27 : vector<1x16xf32> to vector<8x16xf32>
    %29 = arith.addf %26, %28 : vector<8x16xf32>
    %30 = vector.extract_strided_slice %17 {offsets = [0, 192], sizes = [8, 4], strides = [1, 1]} : vector<8x196xf32> to vector<8x4xf32>
    %c0_10 = arith.constant 0 : index
    %c0_11 = arith.constant 0 : index
    %31 = vector.load %arg2[%c0_10, %c0_11] : memref<8x32xf32, #tpu.memory_space<vmem>>, vector<8x32xf32>
    %32 = arith.mulf %18, %31 : vector<8x32xf32>
    %c0_12 = arith.constant 0 : index
    %c0_13 = arith.constant 0 : index
    %33 = vector.load %arg3[%c0_12, %c0_13] : memref<8x32xf32, #tpu.memory_space<vmem>>, vector<8x32xf32>
    %34 = arith.mulf %19, %33 : vector<8x32xf32>
    %35 = arith.addf %32, %34 : vector<8x32xf32>
    %c0_14 = arith.constant 0 : index
    %c0_15 = arith.constant 0 : index
    %36 = vector.load %arg4[%c0_14, %c0_15] : memref<8x16xf32, #tpu.memory_space<vmem>>, vector<8x16xf32>
    %37 = arith.mulf %20, %36 : vector<8x16xf32>
    %c0_16 = arith.constant 0 : index
    %c0_17 = arith.constant 0 : index
    %38 = vector.load %arg5[%c0_16, %c0_17] : memref<8x16xf32, #tpu.memory_space<vmem>>, vector<8x16xf32>
    %39 = arith.mulf %21, %38 : vector<8x16xf32>
    %40 = arith.addf %37, %39 : vector<8x16xf32>
    %cst_18 = arith.constant dense<0xFF800000> : vector<8xf32>
    %41 = vector.multi_reduction <maximumf>, %30, %cst_18 [1] : vector<8x4xf32> to vector<8xf32>
    %42 = vector.shape_cast %41 : vector<8xf32> to vector<8x1xf32>
    %43 = vector.broadcast %42 : vector<8x1xf32> to vector<8x4xf32>
    %44 = arith.subf %30, %43 : vector<8x4xf32>
    %45 = math.exp %44 : vector<8x4xf32>
    %cst_19 = arith.constant dense<0.000000e+00> : vector<8xf32>
    %46 = vector.multi_reduction <add>, %45, %cst_19 [1] : vector<8x4xf32> to vector<8xf32>
    %47 = vector.shape_cast %46 : vector<8xf32> to vector<8x1xf32>
    %cst_20 = arith.constant 1.000000e+00 : f32
    %48 = vector.broadcast %cst_20 : f32 to vector<8x1xf32>
    %49 = arith.divf %48, %47 : vector<8x1xf32>
    %50 = tpu.iota {dimensions = array<i32: 1>} : vector<8x4xi32>
    %51 = vector.broadcast %42 : vector<8x1xf32> to vector<8x4xf32>
    %52 = arith.cmpf oeq, %30, %51 : vector<8x4xf32>
    %c4_i32 = arith.constant 4 : i32
    %53 = vector.broadcast %c4_i32 : i32 to vector<8x4xi32>
    %54 = arith.select %52, %50, %53 : vector<8x4xi1>, vector<8x4xi32>
    %cst_21 = arith.constant dense<2147483647> : vector<8xi32>
    %55 = vector.multi_reduction <minsi>, %54, %cst_21 [1] : vector<8x4xi32> to vector<8xi32>
    %56 = vector.shape_cast %55 : vector<8xi32> to vector<8x1xi32>
    %57 = vector.shape_cast %56 : vector<8x1xi32> to vector<8x1xi32>
    %58 = vector.broadcast %57 : vector<8x1xi32> to vector<8x4xi32>
    %59 = arith.cmpi eq, %58, %50 : vector<8x4xi32>
    %60 = arith.extui %59 : vector<8x4xi1> to vector<8x4xi32>
    %61 = arith.sitofp %60 : vector<8x4xi32> to vector<8x4xf32>
    %cst_22 = arith.constant dense<0.000000e+00> : vector<8x8xf32>
    %62 = tpu.matmul %61, %61, %cst_22 {dimension_numbers = #tpu.dot_dimension_numbers<[1], [1], [0], [0], [0, 0, 1, 0], [], []>} : vector<8x4xf32>, vector<8x4xf32>, vector<8x8xf32> -> vector<8x8xf32>
    %cst_23 = arith.constant 5.000000e-01 : f32
    %63 = vector.broadcast %cst_23 : f32 to vector<8x8xf32>
    %64 = arith.cmpf ogt, %62, %63 : vector<8x8xf32>
    %65 = tpu.iota {dimensions = array<i32: 0>} : vector<8x8xi32>
    %66 = tpu.iota {dimensions = array<i32: 1>} : vector<8x8xi32>
    %67 = arith.cmpi sle, %66, %65 : vector<8x8xi32>
    %68 = arith.andi %64, %67 : vector<8x8xi1>
    %69 = arith.cmpi sle, %65, %66 : vector<8x8xi32>
    %70 = arith.andi %64, %69 : vector<8x8xi1>
    %71 = arith.extui %68 : vector<8x8xi1> to vector<8x8xi32>
    %cst_24 = arith.constant dense<0> : vector<8xi32>
    %72 = vector.multi_reduction <add>, %71, %cst_24 [1] : vector<8x8xi32> to vector<8xi32>
    %73 = vector.shape_cast %72 : vector<8xi32> to vector<8x1xi32>
    %74 = arith.extui %70 : vector<8x8xi1> to vector<8x8xi32>
    %cst_25 = arith.constant dense<0> : vector<8xi32>
    %75 = vector.multi_reduction <add>, %74, %cst_25 [0] : vector<8x8xi32> to vector<8xi32>
    %76 = vector.shape_cast %75 : vector<8xi32> to vector<1x8xi32>
    %77 = vector.broadcast %73 : vector<8x1xi32> to vector<8x8xi32>
    %78 = vector.broadcast %76 : vector<1x8xi32> to vector<8x8xi32>
    %79 = arith.subi %77, %78 : vector<8x8xi32>
    %c4_i32_26 = arith.constant 4 : i32
    %80 = vector.broadcast %c4_i32_26 : i32 to vector<8x8xi32>
    %81 = arith.cmpi sle, %79, %80 : vector<8x8xi32>
    %82 = arith.andi %68, %81 : vector<8x8xi1>
    %83 = vector.extract_strided_slice %35 {offsets = [0, 0], sizes = [8, 8], strides = [1, 1]} : vector<8x32xf32> to vector<8x8xf32>
    %84 = vector.extract_strided_slice %40 {offsets = [0, 0], sizes = [8, 8], strides = [1, 1]} : vector<8x16xf32> to vector<8x8xf32>
    %85 = vector.extract_strided_slice %22 {offsets = [0, 0], sizes = [8, 8], strides = [1, 1]} : vector<8x16xf32> to vector<8x8xf32>
    %86 = arith.truncf %83 : vector<8x8xf32> to vector<8x8xbf16>
    %87 = arith.truncf %84 : vector<8x8xf32> to vector<8x8xbf16>
    %cst_27 = arith.constant dense<0.000000e+00> : vector<8x8xf32>
    %88 = tpu.matmul %86, %87, %cst_27 {dimension_numbers = #tpu.dot_dimension_numbers<[1], [1], [0], [0], [0, 0, 1, 0], [], []>} : vector<8x8xbf16>, vector<8x8xbf16>, vector<8x8xf32> -> vector<8x8xf32>
    %cst_28 = arith.constant 0.353553385 : f32
    %89 = vector.broadcast %cst_28 : f32 to vector<8x8xf32>
    %90 = arith.mulf %88, %89 : vector<8x8xf32>
    %cst_29 = arith.constant -1.000000e+30 : f32
    %91 = vector.broadcast %cst_29 : f32 to vector<8x8xf32>
    %92 = arith.select %82, %90, %91 : vector<8x8xi1>, vector<8x8xf32>
    %cst_30 = arith.constant dense<0xFF800000> : vector<8xf32>
    %93 = vector.multi_reduction <maximumf>, %92, %cst_30 [1] : vector<8x8xf32> to vector<8xf32>
    %94 = vector.shape_cast %93 : vector<8xf32> to vector<8x1xf32>
    %95 = vector.broadcast %94 : vector<8x1xf32> to vector<8x8xf32>
    %96 = arith.subf %92, %95 : vector<8x8xf32>
    %97 = math.exp %96 : vector<8x8xf32>
    %cst_31 = arith.constant dense<0.000000e+00> : vector<8xf32>
    %98 = vector.multi_reduction <add>, %97, %cst_31 [1] : vector<8x8xf32> to vector<8xf32>
    %99 = vector.shape_cast %98 : vector<8xf32> to vector<8x1xf32>
    %100 = tpu.reciprocal %99 {approx = true} : vector<8x1xf32> -> vector<8x1xf32>
    %101 = vector.broadcast %100 : vector<8x1xf32> to vector<8x8xf32>
    %102 = arith.mulf %97, %101 : vector<8x8xf32>
    %103 = arith.truncf %102 : vector<8x8xf32> to vector<8x8xbf16>
    %104 = arith.truncf %85 : vector<8x8xf32> to vector<8x8xbf16>
    %cst_32 = arith.constant dense<0.000000e+00> : vector<8x8xf32>
    %105 = tpu.matmul %103, %104, %cst_32 {dimension_numbers = #tpu.dot_dimension_numbers<[1], [0], [0], [1], [0, 0, 1, 1], [], []>} : vector<8x8xbf16>, vector<8x8xbf16>, vector<8x8xf32> -> vector<8x8xf32>
    %106 = vector.extract_strided_slice %35 {offsets = [0, 8], sizes = [8, 8], strides = [1, 1]} : vector<8x32xf32> to vector<8x8xf32>
    %107 = vector.extract_strided_slice %40 {offsets = [0, 0], sizes = [8, 8], strides = [1, 1]} : vector<8x16xf32> to vector<8x8xf32>
    %108 = vector.extract_strided_slice %22 {offsets = [0, 0], sizes = [8, 8], strides = [1, 1]} : vector<8x16xf32> to vector<8x8xf32>
    %109 = arith.truncf %106 : vector<8x8xf32> to vector<8x8xbf16>
    %110 = arith.truncf %107 : vector<8x8xf32> to vector<8x8xbf16>
    %cst_33 = arith.constant dense<0.000000e+00> : vector<8x8xf32>
    %111 = tpu.matmul %109, %110, %cst_33 {dimension_numbers = #tpu.dot_dimension_numbers<[1], [1], [0], [0], [0, 0, 1, 0], [], []>} : vector<8x8xbf16>, vector<8x8xbf16>, vector<8x8xf32> -> vector<8x8xf32>
    %cst_34 = arith.constant 0.353553385 : f32
    %112 = vector.broadcast %cst_34 : f32 to vector<8x8xf32>
    %113 = arith.mulf %111, %112 : vector<8x8xf32>
    %cst_35 = arith.constant -1.000000e+30 : f32
    %114 = vector.broadcast %cst_35 : f32 to vector<8x8xf32>
    %115 = arith.select %82, %113, %114 : vector<8x8xi1>, vector<8x8xf32>
    %cst_36 = arith.constant dense<0xFF800000> : vector<8xf32>
    %116 = vector.multi_reduction <maximumf>, %115, %cst_36 [1] : vector<8x8xf32> to vector<8xf32>
    %117 = vector.shape_cast %116 : vector<8xf32> to vector<8x1xf32>
    %118 = vector.broadcast %117 : vector<8x1xf32> to vector<8x8xf32>
    %119 = arith.subf %115, %118 : vector<8x8xf32>
    %120 = math.exp %119 : vector<8x8xf32>
    %cst_37 = arith.constant dense<0.000000e+00> : vector<8xf32>
    %121 = vector.multi_reduction <add>, %120, %cst_37 [1] : vector<8x8xf32> to vector<8xf32>
    %122 = vector.shape_cast %121 : vector<8xf32> to vector<8x1xf32>
    %123 = tpu.reciprocal %122 {approx = true} : vector<8x1xf32> -> vector<8x1xf32>
    %124 = vector.broadcast %123 : vector<8x1xf32> to vector<8x8xf32>
    %125 = arith.mulf %120, %124 : vector<8x8xf32>
    %126 = arith.truncf %125 : vector<8x8xf32> to vector<8x8xbf16>
    %127 = arith.truncf %108 : vector<8x8xf32> to vector<8x8xbf16>
    %cst_38 = arith.constant dense<0.000000e+00> : vector<8x8xf32>
    %128 = tpu.matmul %126, %127, %cst_38 {dimension_numbers = #tpu.dot_dimension_numbers<[1], [0], [0], [1], [0, 0, 1, 1], [], []>} : vector<8x8xbf16>, vector<8x8xbf16>, vector<8x8xf32> -> vector<8x8xf32>
    %129 = vector.extract_strided_slice %35 {offsets = [0, 16], sizes = [8, 8], strides = [1, 1]} : vector<8x32xf32> to vector<8x8xf32>
    %130 = vector.extract_strided_slice %40 {offsets = [0, 8], sizes = [8, 8], strides = [1, 1]} : vector<8x16xf32> to vector<8x8xf32>
    %131 = vector.extract_strided_slice %22 {offsets = [0, 8], sizes = [8, 8], strides = [1, 1]} : vector<8x16xf32> to vector<8x8xf32>
    %132 = arith.truncf %129 : vector<8x8xf32> to vector<8x8xbf16>
    %133 = arith.truncf %130 : vector<8x8xf32> to vector<8x8xbf16>
    %cst_39 = arith.constant dense<0.000000e+00> : vector<8x8xf32>
    %134 = tpu.matmul %132, %133, %cst_39 {dimension_numbers = #tpu.dot_dimension_numbers<[1], [1], [0], [0], [0, 0, 1, 0], [], []>} : vector<8x8xbf16>, vector<8x8xbf16>, vector<8x8xf32> -> vector<8x8xf32>
    %cst_40 = arith.constant 0.353553385 : f32
    %135 = vector.broadcast %cst_40 : f32 to vector<8x8xf32>
    %136 = arith.mulf %134, %135 : vector<8x8xf32>
    %cst_41 = arith.constant -1.000000e+30 : f32
    %137 = vector.broadcast %cst_41 : f32 to vector<8x8xf32>
    %138 = arith.select %82, %136, %137 : vector<8x8xi1>, vector<8x8xf32>
    %cst_42 = arith.constant dense<0xFF800000> : vector<8xf32>
    %139 = vector.multi_reduction <maximumf>, %138, %cst_42 [1] : vector<8x8xf32> to vector<8xf32>
    %140 = vector.shape_cast %139 : vector<8xf32> to vector<8x1xf32>
    %141 = vector.broadcast %140 : vector<8x1xf32> to vector<8x8xf32>
    %142 = arith.subf %138, %141 : vector<8x8xf32>
    %143 = math.exp %142 : vector<8x8xf32>
    %cst_43 = arith.constant dense<0.000000e+00> : vector<8xf32>
    %144 = vector.multi_reduction <add>, %143, %cst_43 [1] : vector<8x8xf32> to vector<8xf32>
    %145 = vector.shape_cast %144 : vector<8xf32> to vector<8x1xf32>
    %146 = tpu.reciprocal %145 {approx = true} : vector<8x1xf32> -> vector<8x1xf32>
    %147 = vector.broadcast %146 : vector<8x1xf32> to vector<8x8xf32>
    %148 = arith.mulf %143, %147 : vector<8x8xf32>
    %149 = arith.truncf %148 : vector<8x8xf32> to vector<8x8xbf16>
    %150 = arith.truncf %131 : vector<8x8xf32> to vector<8x8xbf16>
    %cst_44 = arith.constant dense<0.000000e+00> : vector<8x8xf32>
    %151 = tpu.matmul %149, %150, %cst_44 {dimension_numbers = #tpu.dot_dimension_numbers<[1], [0], [0], [1], [0, 0, 1, 1], [], []>} : vector<8x8xbf16>, vector<8x8xbf16>, vector<8x8xf32> -> vector<8x8xf32>
    %152 = vector.extract_strided_slice %35 {offsets = [0, 24], sizes = [8, 8], strides = [1, 1]} : vector<8x32xf32> to vector<8x8xf32>
    %153 = vector.extract_strided_slice %40 {offsets = [0, 8], sizes = [8, 8], strides = [1, 1]} : vector<8x16xf32> to vector<8x8xf32>
    %154 = vector.extract_strided_slice %22 {offsets = [0, 8], sizes = [8, 8], strides = [1, 1]} : vector<8x16xf32> to vector<8x8xf32>
    %155 = arith.truncf %152 : vector<8x8xf32> to vector<8x8xbf16>
    %156 = arith.truncf %153 : vector<8x8xf32> to vector<8x8xbf16>
    %cst_45 = arith.constant dense<0.000000e+00> : vector<8x8xf32>
    %157 = tpu.matmul %155, %156, %cst_45 {dimension_numbers = #tpu.dot_dimension_numbers<[1], [1], [0], [0], [0, 0, 1, 0], [], []>} : vector<8x8xbf16>, vector<8x8xbf16>, vector<8x8xf32> -> vector<8x8xf32>
    %cst_46 = arith.constant 0.353553385 : f32
    %158 = vector.broadcast %cst_46 : f32 to vector<8x8xf32>
    %159 = arith.mulf %157, %158 : vector<8x8xf32>
    %cst_47 = arith.constant -1.000000e+30 : f32
    %160 = vector.broadcast %cst_47 : f32 to vector<8x8xf32>
    %161 = arith.select %82, %159, %160 : vector<8x8xi1>, vector<8x8xf32>
    %cst_48 = arith.constant dense<0xFF800000> : vector<8xf32>
    %162 = vector.multi_reduction <maximumf>, %161, %cst_48 [1] : vector<8x8xf32> to vector<8xf32>
    %163 = vector.shape_cast %162 : vector<8xf32> to vector<8x1xf32>
    %164 = vector.broadcast %163 : vector<8x1xf32> to vector<8x8xf32>
    %165 = arith.subf %161, %164 : vector<8x8xf32>
    %166 = math.exp %165 : vector<8x8xf32>
    %cst_49 = arith.constant dense<0.000000e+00> : vector<8xf32>
    %167 = vector.multi_reduction <add>, %166, %cst_49 [1] : vector<8x8xf32> to vector<8xf32>
    %168 = vector.shape_cast %167 : vector<8xf32> to vector<8x1xf32>
    %169 = tpu.reciprocal %168 {approx = true} : vector<8x1xf32> -> vector<8x1xf32>
    %170 = vector.broadcast %169 : vector<8x1xf32> to vector<8x8xf32>
    %171 = arith.mulf %166, %170 : vector<8x8xf32>
    %172 = arith.truncf %171 : vector<8x8xf32> to vector<8x8xbf16>
    %173 = arith.truncf %154 : vector<8x8xf32> to vector<8x8xbf16>
    %cst_50 = arith.constant dense<0.000000e+00> : vector<8x8xf32>
    %174 = tpu.matmul %172, %173, %cst_50 {dimension_numbers = #tpu.dot_dimension_numbers<[1], [0], [0], [1], [0, 0, 1, 1], [], []>} : vector<8x8xbf16>, vector<8x8xbf16>, vector<8x8xf32> -> vector<8x8xf32>
    %175 = tpu.concatenate %105, %128, %151, %174 in 1 : vector<8x8xf32>, vector<8x8xf32>, vector<8x8xf32>, vector<8x8xf32> -> vector<8x32xf32>
    %176 = arith.truncf %175 : vector<8x32xf32> to vector<8x32xbf16>
    %c0_51 = arith.constant 0 : index
    %c0_52 = arith.constant 0 : index
    %177 = vector.load %arg9[%c0_51, %c0_52] : memref<32x32xf32, #tpu.memory_space<vmem>>, vector<32x32xf32>
    %178 = arith.truncf %177 : vector<32x32xf32> to vector<32x32xbf16>
    %cst_53 = arith.constant dense<0.000000e+00> : vector<8x32xf32>
    %179 = tpu.matmul %176, %178, %cst_53 {dimension_numbers = #tpu.dot_dimension_numbers<[1], [0], [0], [1], [0, 0, 1, 1], [], []>} : vector<8x32xbf16>, vector<32x32xbf16>, vector<8x32xf32> -> vector<8x32xf32>
    %180 = vector.broadcast %49 : vector<8x1xf32> to vector<8x32xf32>
    %181 = arith.mulf %179, %180 : vector<8x32xf32>
    %cst_54 = arith.constant 0.000000e+00 : f32
    %182 = vector.broadcast %cst_54 : f32 to vector<8x32xf32>
    %183 = arith.maximumf %23, %182 : vector<8x32xf32>
    %cst_55 = arith.constant 0.000000e+00 : f32
    %184 = vector.broadcast %cst_55 : f32 to vector<8x16xf32>
    %185 = arith.maximumf %24, %184 : vector<8x16xf32>
    %186 = math.absf %29 : vector<8x16xf32>
    %cst_56 = arith.constant 0.000000e+00 : f32
    %187 = vector.broadcast %cst_56 : f32 to vector<8x16xf32>
    %188 = arith.subf %187, %186 : vector<8x16xf32>
    %189 = math.exp %188 : vector<8x16xf32>
    %cst_57 = arith.constant 0.000000e+00 : f32
    %190 = vector.broadcast %cst_57 : f32 to vector<8x16xf32>
    %191 = arith.minimumf %29, %190 : vector<8x16xf32>
    %cst_58 = arith.constant 1.000000e+00 : f32
    %192 = vector.broadcast %cst_58 : f32 to vector<8x16xf32>
    %193 = arith.addf %192, %189 : vector<8x16xf32>
    %194 = math.log %193 : vector<8x16xf32>
    %195 = arith.subf %191, %194 : vector<8x16xf32>
    %cst_59 = arith.constant 1.600000e+01 : f32
    %196 = vector.broadcast %cst_59 : f32 to vector<8x16xf32>
    %197 = arith.divf %195, %196 : vector<8x16xf32>
    %198 = arith.extui %67 : vector<8x8xi1> to vector<8x8xi32>
    %199 = arith.sitofp %198 : vector<8x8xi32> to vector<8x8xf32>
    %cst_60 = arith.constant dense<0.000000e+00> : vector<8x16xf32>
    %200 = tpu.matmul %199, %197, %cst_60 {dimension_numbers = #tpu.dot_dimension_numbers<[1], [0], [0], [1], [0, 0, 1, 1], [], []>} : vector<8x8xf32>, vector<8x16xf32>, vector<8x16xf32> -> vector<8x16xf32>
    %201 = math.exp %200 : vector<8x16xf32>
    %cst_61 = arith.constant 0.000000e+00 : f32
    %202 = vector.broadcast %cst_61 : f32 to vector<8x16xf32>
    %203 = arith.subf %202, %200 : vector<8x16xf32>
    %204 = math.exp %203 : vector<8x16xf32>
    %c0_62 = arith.constant 0 : index
    %c0_63 = arith.constant 0 : index
    %205 = vector.load %arg11[%c0_62, %c0_63] : memref<1x8xf32, #tpu.memory_space<vmem>>, vector<1x8xf32>
    %206 = vector.extract_strided_slice %183 {offsets = [0, 0], sizes = [8, 8], strides = [1, 1]} : vector<8x32xf32> to vector<8x8xf32>
    %207 = vector.extract_strided_slice %201 {offsets = [0, 0], sizes = [8, 8], strides = [1, 1]} : vector<8x16xf32> to vector<8x8xf32>
    %208 = arith.mulf %206, %207 : vector<8x8xf32>
    %cst_64 = arith.constant 0.353553385 : f32
    %209 = vector.broadcast %cst_64 : f32 to vector<8x8xf32>
    %210 = arith.mulf %208, %209 : vector<8x8xf32>
    %211 = vector.extract_strided_slice %185 {offsets = [0, 0], sizes = [8, 8], strides = [1, 1]} : vector<8x16xf32> to vector<8x8xf32>
    %212 = vector.extract_strided_slice %204 {offsets = [0, 0], sizes = [8, 8], strides = [1, 1]} : vector<8x16xf32> to vector<8x8xf32>
    %213 = arith.mulf %211, %212 : vector<8x8xf32>
    %214 = vector.extract_strided_slice %25 {offsets = [0, 0], sizes = [8, 8], strides = [1, 1]} : vector<8x16xf32> to vector<8x8xf32>
    %215 = arith.truncf %210 : vector<8x8xf32> to vector<8x8xbf16>
    %216 = arith.truncf %213 : vector<8x8xf32> to vector<8x8xbf16>
    %cst_65 = arith.constant dense<0.000000e+00> : vector<8x8xf32>
    %217 = tpu.matmul %215, %216, %cst_65 {dimension_numbers = #tpu.dot_dimension_numbers<[1], [1], [0], [0], [0, 0, 1, 0], [], []>} : vector<8x8xbf16>, vector<8x8xbf16>, vector<8x8xf32> -> vector<8x8xf32>
    %cst_66 = arith.constant 0.000000e+00 : f32
    %218 = vector.broadcast %cst_66 : f32 to vector<8x8xf32>
    %219 = arith.select %67, %217, %218 : vector<8x8xi1>, vector<8x8xf32>
    %220 = arith.truncf %219 : vector<8x8xf32> to vector<8x8xbf16>
    %221 = arith.truncf %214 : vector<8x8xf32> to vector<8x8xbf16>
    %cst_67 = arith.constant dense<0.000000e+00> : vector<8x8xf32>
    %222 = tpu.matmul %220, %221, %cst_67 {dimension_numbers = #tpu.dot_dimension_numbers<[1], [0], [0], [1], [0, 0, 1, 1], [], []>} : vector<8x8xbf16>, vector<8x8xbf16>, vector<8x8xf32> -> vector<8x8xf32>
    %223 = arith.mulf %222, %222 : vector<8x8xf32>
    %cst_68 = arith.constant dense<0.000000e+00> : vector<8xf32>
    %224 = vector.multi_reduction <add>, %223, %cst_68 [1] : vector<8x8xf32> to vector<8xf32>
    %225 = vector.shape_cast %224 : vector<8xf32> to vector<8x1xf32>
    %cst_69 = arith.constant 8.000000e+00 : f32
    %226 = vector.broadcast %cst_69 : f32 to vector<8x1xf32>
    %227 = arith.divf %225, %226 : vector<8x1xf32>
    %cst_70 = arith.constant 9.99999997E-7 : f32
    %228 = vector.broadcast %cst_70 : f32 to vector<8x1xf32>
    %229 = arith.addf %227, %228 : vector<8x1xf32>
    %230 = math.rsqrt %229 : vector<8x1xf32>
    %231 = vector.broadcast %230 : vector<8x1xf32> to vector<8x8xf32>
    %232 = arith.mulf %222, %231 : vector<8x8xf32>
    %233 = vector.broadcast %205 : vector<1x8xf32> to vector<8x8xf32>
    %234 = arith.mulf %232, %233 : vector<8x8xf32>
    %235 = vector.extract_strided_slice %183 {offsets = [0, 8], sizes = [8, 8], strides = [1, 1]} : vector<8x32xf32> to vector<8x8xf32>
    %236 = vector.extract_strided_slice %201 {offsets = [0, 0], sizes = [8, 8], strides = [1, 1]} : vector<8x16xf32> to vector<8x8xf32>
    %237 = arith.mulf %235, %236 : vector<8x8xf32>
    %cst_71 = arith.constant 0.353553385 : f32
    %238 = vector.broadcast %cst_71 : f32 to vector<8x8xf32>
    %239 = arith.mulf %237, %238 : vector<8x8xf32>
    %240 = vector.extract_strided_slice %185 {offsets = [0, 0], sizes = [8, 8], strides = [1, 1]} : vector<8x16xf32> to vector<8x8xf32>
    %241 = vector.extract_strided_slice %204 {offsets = [0, 0], sizes = [8, 8], strides = [1, 1]} : vector<8x16xf32> to vector<8x8xf32>
    %242 = arith.mulf %240, %241 : vector<8x8xf32>
    %243 = vector.extract_strided_slice %25 {offsets = [0, 0], sizes = [8, 8], strides = [1, 1]} : vector<8x16xf32> to vector<8x8xf32>
    %244 = arith.truncf %239 : vector<8x8xf32> to vector<8x8xbf16>
    %245 = arith.truncf %242 : vector<8x8xf32> to vector<8x8xbf16>
    %cst_72 = arith.constant dense<0.000000e+00> : vector<8x8xf32>
    %246 = tpu.matmul %244, %245, %cst_72 {dimension_numbers = #tpu.dot_dimension_numbers<[1], [1], [0], [0], [0, 0, 1, 0], [], []>} : vector<8x8xbf16>, vector<8x8xbf16>, vector<8x8xf32> -> vector<8x8xf32>
    %cst_73 = arith.constant 0.000000e+00 : f32
    %247 = vector.broadcast %cst_73 : f32 to vector<8x8xf32>
    %248 = arith.select %67, %246, %247 : vector<8x8xi1>, vector<8x8xf32>
    %249 = arith.truncf %248 : vector<8x8xf32> to vector<8x8xbf16>
    %250 = arith.truncf %243 : vector<8x8xf32> to vector<8x8xbf16>
    %cst_74 = arith.constant dense<0.000000e+00> : vector<8x8xf32>
    %251 = tpu.matmul %249, %250, %cst_74 {dimension_numbers = #tpu.dot_dimension_numbers<[1], [0], [0], [1], [0, 0, 1, 1], [], []>} : vector<8x8xbf16>, vector<8x8xbf16>, vector<8x8xf32> -> vector<8x8xf32>
    %252 = arith.mulf %251, %251 : vector<8x8xf32>
    %cst_75 = arith.constant dense<0.000000e+00> : vector<8xf32>
    %253 = vector.multi_reduction <add>, %252, %cst_75 [1] : vector<8x8xf32> to vector<8xf32>
    %254 = vector.shape_cast %253 : vector<8xf32> to vector<8x1xf32>
    %cst_76 = arith.constant 8.000000e+00 : f32
    %255 = vector.broadcast %cst_76 : f32 to vector<8x1xf32>
    %256 = arith.divf %254, %255 : vector<8x1xf32>
    %cst_77 = arith.constant 9.99999997E-7 : f32
    %257 = vector.broadcast %cst_77 : f32 to vector<8x1xf32>
    %258 = arith.addf %256, %257 : vector<8x1xf32>
    %259 = math.rsqrt %258 : vector<8x1xf32>
    %260 = vector.broadcast %259 : vector<8x1xf32> to vector<8x8xf32>
    %261 = arith.mulf %251, %260 : vector<8x8xf32>
    %262 = vector.broadcast %205 : vector<1x8xf32> to vector<8x8xf32>
    %263 = arith.mulf %261, %262 : vector<8x8xf32>
    %264 = vector.extract_strided_slice %183 {offsets = [0, 16], sizes = [8, 8], strides = [1, 1]} : vector<8x32xf32> to vector<8x8xf32>
    %265 = vector.extract_strided_slice %201 {offsets = [0, 8], sizes = [8, 8], strides = [1, 1]} : vector<8x16xf32> to vector<8x8xf32>
    %266 = arith.mulf %264, %265 : vector<8x8xf32>
    %cst_78 = arith.constant 0.353553385 : f32
    %267 = vector.broadcast %cst_78 : f32 to vector<8x8xf32>
    %268 = arith.mulf %266, %267 : vector<8x8xf32>
    %269 = vector.extract_strided_slice %185 {offsets = [0, 8], sizes = [8, 8], strides = [1, 1]} : vector<8x16xf32> to vector<8x8xf32>
    %270 = vector.extract_strided_slice %204 {offsets = [0, 8], sizes = [8, 8], strides = [1, 1]} : vector<8x16xf32> to vector<8x8xf32>
    %271 = arith.mulf %269, %270 : vector<8x8xf32>
    %272 = vector.extract_strided_slice %25 {offsets = [0, 8], sizes = [8, 8], strides = [1, 1]} : vector<8x16xf32> to vector<8x8xf32>
    %273 = arith.truncf %268 : vector<8x8xf32> to vector<8x8xbf16>
    %274 = arith.truncf %271 : vector<8x8xf32> to vector<8x8xbf16>
    %cst_79 = arith.constant dense<0.000000e+00> : vector<8x8xf32>
    %275 = tpu.matmul %273, %274, %cst_79 {dimension_numbers = #tpu.dot_dimension_numbers<[1], [1], [0], [0], [0, 0, 1, 0], [], []>} : vector<8x8xbf16>, vector<8x8xbf16>, vector<8x8xf32> -> vector<8x8xf32>
    %cst_80 = arith.constant 0.000000e+00 : f32
    %276 = vector.broadcast %cst_80 : f32 to vector<8x8xf32>
    %277 = arith.select %67, %275, %276 : vector<8x8xi1>, vector<8x8xf32>
    %278 = arith.truncf %277 : vector<8x8xf32> to vector<8x8xbf16>
    %279 = arith.truncf %272 : vector<8x8xf32> to vector<8x8xbf16>
    %cst_81 = arith.constant dense<0.000000e+00> : vector<8x8xf32>
    %280 = tpu.matmul %278, %279, %cst_81 {dimension_numbers = #tpu.dot_dimension_numbers<[1], [0], [0], [1], [0, 0, 1, 1], [], []>} : vector<8x8xbf16>, vector<8x8xbf16>, vector<8x8xf32> -> vector<8x8xf32>
    %281 = arith.mulf %280, %280 : vector<8x8xf32>
    %cst_82 = arith.constant dense<0.000000e+00> : vector<8xf32>
    %282 = vector.multi_reduction <add>, %281, %cst_82 [1] : vector<8x8xf32> to vector<8xf32>
    %283 = vector.shape_cast %282 : vector<8xf32> to vector<8x1xf32>
    %cst_83 = arith.constant 8.000000e+00 : f32
    %284 = vector.broadcast %cst_83 : f32 to vector<8x1xf32>
    %285 = arith.divf %283, %284 : vector<8x1xf32>
    %cst_84 = arith.constant 9.99999997E-7 : f32
    %286 = vector.broadcast %cst_84 : f32 to vector<8x1xf32>
    %287 = arith.addf %285, %286 : vector<8x1xf32>
    %288 = math.rsqrt %287 : vector<8x1xf32>
    %289 = vector.broadcast %288 : vector<8x1xf32> to vector<8x8xf32>
    %290 = arith.mulf %280, %289 : vector<8x8xf32>
    %291 = vector.broadcast %205 : vector<1x8xf32> to vector<8x8xf32>
    %292 = arith.mulf %290, %291 : vector<8x8xf32>
    %293 = vector.extract_strided_slice %183 {offsets = [0, 24], sizes = [8, 8], strides = [1, 1]} : vector<8x32xf32> to vector<8x8xf32>
    %294 = vector.extract_strided_slice %201 {offsets = [0, 8], sizes = [8, 8], strides = [1, 1]} : vector<8x16xf32> to vector<8x8xf32>
    %295 = arith.mulf %293, %294 : vector<8x8xf32>
    %cst_85 = arith.constant 0.353553385 : f32
    %296 = vector.broadcast %cst_85 : f32 to vector<8x8xf32>
    %297 = arith.mulf %295, %296 : vector<8x8xf32>
    %298 = vector.extract_strided_slice %185 {offsets = [0, 8], sizes = [8, 8], strides = [1, 1]} : vector<8x16xf32> to vector<8x8xf32>
    %299 = vector.extract_strided_slice %204 {offsets = [0, 8], sizes = [8, 8], strides = [1, 1]} : vector<8x16xf32> to vector<8x8xf32>
    %300 = arith.mulf %298, %299 : vector<8x8xf32>
    %301 = vector.extract_strided_slice %25 {offsets = [0, 8], sizes = [8, 8], strides = [1, 1]} : vector<8x16xf32> to vector<8x8xf32>
    %302 = arith.truncf %297 : vector<8x8xf32> to vector<8x8xbf16>
    %303 = arith.truncf %300 : vector<8x8xf32> to vector<8x8xbf16>
    %cst_86 = arith.constant dense<0.000000e+00> : vector<8x8xf32>
    %304 = tpu.matmul %302, %303, %cst_86 {dimension_numbers = #tpu.dot_dimension_numbers<[1], [1], [0], [0], [0, 0, 1, 0], [], []>} : vector<8x8xbf16>, vector<8x8xbf16>, vector<8x8xf32> -> vector<8x8xf32>
    %cst_87 = arith.constant 0.000000e+00 : f32
    %305 = vector.broadcast %cst_87 : f32 to vector<8x8xf32>
    %306 = arith.select %67, %304, %305 : vector<8x8xi1>, vector<8x8xf32>
    %307 = arith.truncf %306 : vector<8x8xf32> to vector<8x8xbf16>
    %308 = arith.truncf %301 : vector<8x8xf32> to vector<8x8xbf16>
    %cst_88 = arith.constant dense<0.000000e+00> : vector<8x8xf32>
    %309 = tpu.matmul %307, %308, %cst_88 {dimension_numbers = #tpu.dot_dimension_numbers<[1], [0], [0], [1], [0, 0, 1, 1], [], []>} : vector<8x8xbf16>, vector<8x8xbf16>, vector<8x8xf32> -> vector<8x8xf32>
    %310 = arith.mulf %309, %309 : vector<8x8xf32>
    %cst_89 = arith.constant dense<0.000000e+00> : vector<8xf32>
    %311 = vector.multi_reduction <add>, %310, %cst_89 [1] : vector<8x8xf32> to vector<8xf32>
    %312 = vector.shape_cast %311 : vector<8xf32> to vector<8x1xf32>
    %cst_90 = arith.constant 8.000000e+00 : f32
    %313 = vector.broadcast %cst_90 : f32 to vector<8x1xf32>
    %314 = arith.divf %312, %313 : vector<8x1xf32>
    %cst_91 = arith.constant 9.99999997E-7 : f32
    %315 = vector.broadcast %cst_91 : f32 to vector<8x1xf32>
    %316 = arith.addf %314, %315 : vector<8x1xf32>
    %317 = math.rsqrt %316 : vector<8x1xf32>
    %318 = vector.broadcast %317 : vector<8x1xf32> to vector<8x8xf32>
    %319 = arith.mulf %309, %318 : vector<8x8xf32>
    %320 = vector.broadcast %205 : vector<1x8xf32> to vector<8x8xf32>
    %321 = arith.mulf %319, %320 : vector<8x8xf32>
    %322 = tpu.concatenate %234, %263, %292, %321 in 1 : vector<8x8xf32>, vector<8x8xf32>, vector<8x8xf32>, vector<8x8xf32> -> vector<8x32xf32>
    %323 = arith.truncf %322 : vector<8x32xf32> to vector<8x32xbf16>
    %c0_92 = arith.constant 0 : index
    %c0_93 = arith.constant 0 : index
    %324 = vector.load %arg10[%c0_92, %c0_93] : memref<32x32xf32, #tpu.memory_space<vmem>>, vector<32x32xf32>
    %325 = arith.truncf %324 : vector<32x32xf32> to vector<32x32xbf16>
    %cst_94 = arith.constant dense<0.000000e+00> : vector<8x32xf32>
    %326 = tpu.matmul %323, %325, %cst_94 {dimension_numbers = #tpu.dot_dimension_numbers<[1], [0], [0], [1], [0, 0, 1, 1], [], []>} : vector<8x32xbf16>, vector<32x32xbf16>, vector<8x32xf32> -> vector<8x32xf32>
    %327 = arith.addf %0, %326 : vector<8x32xf32>
    %328 = arith.addf %327, %181 : vector<8x32xf32>
    %329 = arith.mulf %328, %328 : vector<8x32xf32>
    %cst_95 = arith.constant dense<0.000000e+00> : vector<8xf32>
    %330 = vector.multi_reduction <add>, %329, %cst_95 [1] : vector<8x32xf32> to vector<8xf32>
    %331 = vector.shape_cast %330 : vector<8xf32> to vector<8x1xf32>
    %cst_96 = arith.constant 3.200000e+01 : f32
    %332 = vector.broadcast %cst_96 : f32 to vector<8x1xf32>
    %333 = arith.divf %331, %332 : vector<8x1xf32>
    %cst_97 = arith.constant 9.99999997E-7 : f32
    %334 = vector.broadcast %cst_97 : f32 to vector<8x1xf32>
    %335 = arith.addf %333, %334 : vector<8x1xf32>
    %336 = math.rsqrt %335 : vector<8x1xf32>
    %337 = vector.broadcast %336 : vector<8x1xf32> to vector<8x32xf32>
    %338 = arith.mulf %328, %337 : vector<8x32xf32>
    %c0_98 = arith.constant 0 : index
    %c0_99 = arith.constant 0 : index
    %339 = vector.load %arg12[%c0_98, %c0_99] : memref<1x32xf32, #tpu.memory_space<vmem>>, vector<1x32xf32>
    %340 = vector.broadcast %339 : vector<1x32xf32> to vector<8x32xf32>
    %341 = arith.mulf %338, %340 : vector<8x32xf32>
    %342 = arith.truncf %341 : vector<8x32xf32> to vector<8x32xbf16>
    %c0_100 = arith.constant 0 : index
    %c0_101 = arith.constant 0 : index
    %343 = vector.load %arg13[%c0_100, %c0_101] : memref<32x128xf32, #tpu.memory_space<vmem>>, vector<32x128xf32>
    %344 = arith.truncf %343 : vector<32x128xf32> to vector<32x128xbf16>
    %cst_102 = arith.constant dense<0.000000e+00> : vector<8x128xf32>
    %345 = tpu.matmul %342, %344, %cst_102 {dimension_numbers = #tpu.dot_dimension_numbers<[1], [0], [0], [1], [0, 0, 1, 1], [], []>} : vector<8x32xbf16>, vector<32x128xbf16>, vector<8x128xf32> -> vector<8x128xf32>
    %346 = vector.extract_strided_slice %345 {offsets = [0, 0], sizes = [8, 64], strides = [1, 1]} : vector<8x128xf32> to vector<8x64xf32>
    %347 = vector.extract_strided_slice %345 {offsets = [0, 64], sizes = [8, 64], strides = [1, 1]} : vector<8x128xf32> to vector<8x64xf32>
    %cst_103 = arith.constant 0.000000e+00 : f32
    %348 = vector.broadcast %cst_103 : f32 to vector<8x64xf32>
    %349 = arith.subf %348, %346 : vector<8x64xf32>
    %350 = math.exp %349 : vector<8x64xf32>
    %cst_104 = arith.constant 1.000000e+00 : f32
    %351 = vector.broadcast %cst_104 : f32 to vector<8x64xf32>
    %352 = arith.addf %351, %350 : vector<8x64xf32>
    %353 = tpu.reciprocal %352 {approx = true} : vector<8x64xf32> -> vector<8x64xf32>
    %354 = arith.mulf %346, %353 : vector<8x64xf32>
    %355 = arith.mulf %354, %347 : vector<8x64xf32>
    %356 = arith.truncf %355 : vector<8x64xf32> to vector<8x64xbf16>
    %c0_105 = arith.constant 0 : index
    %c0_106 = arith.constant 0 : index
    %357 = vector.load %arg14[%c0_105, %c0_106] : memref<64x32xf32, #tpu.memory_space<vmem>>, vector<64x32xf32>
    %358 = arith.truncf %357 : vector<64x32xf32> to vector<64x32xbf16>
    %cst_107 = arith.constant dense<0.000000e+00> : vector<8x32xf32>
    %359 = tpu.matmul %356, %358, %cst_107 {dimension_numbers = #tpu.dot_dimension_numbers<[1], [0], [0], [1], [0, 0, 1, 1], [], []>} : vector<8x64xbf16>, vector<64x32xbf16>, vector<8x32xf32> -> vector<8x32xf32>
    %360 = arith.addf %328, %359 : vector<8x32xf32>
    %c0_108 = arith.constant 0 : index
    %c0_109 = arith.constant 0 : index
    %361 = vector.load %arg15[%c0_108, %c0_109] : memref<8x32xf32, #tpu.memory_space<vmem>>, vector<8x32xf32>
    tpu.vector_store %arg15[%c0_108, %c0_109], %360 {strides = array<i32>} : memref<8x32xf32, #tpu.memory_space<vmem>>, vector<8x32xf32>,
    return
  }
  func.func @transform_0(%arg0: i32) -> (i32, i32) {
    %c0_i32 = arith.constant 0 : i32
    %c0_i32_0 = arith.constant 0 : i32
    return %arg0, %c0_i32 : i32, i32
  }
  func.func @transform_1(%arg0: i32) -> (i32, i32) {
    %c0_i32 = arith.constant 0 : i32
    %c0_i32_0 = arith.constant 0 : i32
    return %arg0, %c0_i32 : i32, i32
  }
  func.func @transform_2(%arg0: i32) -> (i32, i32) {
    %c0_i32 = arith.constant 0 : i32
    %c0_i32_0 = arith.constant 0 : i32
    return %arg0, %c0_i32 : i32, i32
  }
  func.func @transform_3(%arg0: i32) -> (i32, i32) {
    %c0_i32 = arith.constant 0 : i32
    %c0_i32_0 = arith.constant 0 : i32
    return %arg0, %c0_i32 : i32, i32
  }
  func.func @transform_4(%arg0: i32) -> (i32, i32) {
    %c0_i32 = arith.constant 0 : i32
    %c0_i32_0 = arith.constant 0 : i32
    return %arg0, %c0_i32 : i32, i32
  }
  func.func @transform_5(%arg0: i32) -> (i32, i32) {
    %c0_i32 = arith.constant 0 : i32
    %c0_i32_0 = arith.constant 0 : i32
    %c0_i32_1 = arith.constant 0 : i32
    return %c0_i32, %c0_i32_0 : i32, i32
  }
  func.func @transform_6(%arg0: i32) -> (i32, i32) {
    %c0_i32 = arith.constant 0 : i32
    %c0_i32_0 = arith.constant 0 : i32
    %c0_i32_1 = arith.constant 0 : i32
    return %c0_i32, %c0_i32_0 : i32, i32
  }
  func.func @transform_7(%arg0: i32) -> (i32, i32) {
    %c0_i32 = arith.constant 0 : i32
    %c0_i32_0 = arith.constant 0 : i32
    %c0_i32_1 = arith.constant 0 : i32
    return %c0_i32, %c0_i32_0 : i32, i32
  }
  func.func @transform_8(%arg0: i32) -> (i32, i32) {
    %c0_i32 = arith.constant 0 : i32
    %c0_i32_0 = arith.constant 0 : i32
    %c0_i32_1 = arith.constant 0 : i32
    return %c0_i32, %c0_i32_0 : i32, i32
  }
  func.func @transform_9(%arg0: i32) -> (i32, i32) {
    %c0_i32 = arith.constant 0 : i32
    %c0_i32_0 = arith.constant 0 : i32
    %c0_i32_1 = arith.constant 0 : i32
    return %c0_i32, %c0_i32_0 : i32, i32
  }
  func.func @transform_10(%arg0: i32) -> (i32, i32) {
    %c0_i32 = arith.constant 0 : i32
    %c0_i32_0 = arith.constant 0 : i32
    %c0_i32_1 = arith.constant 0 : i32
    return %c0_i32, %c0_i32_0 : i32, i32
  }
  func.func @transform_11(%arg0: i32) -> (i32, i32) {
    %c0_i32 = arith.constant 0 : i32
    %c0_i32_0 = arith.constant 0 : i32
    %c0_i32_1 = arith.constant 0 : i32
    return %c0_i32, %c0_i32_0 : i32, i32
  }
  func.func @transform_12(%arg0: i32) -> (i32, i32) {
    %c0_i32 = arith.constant 0 : i32
    %c0_i32_0 = arith.constant 0 : i32
    %c0_i32_1 = arith.constant 0 : i32
    return %c0_i32, %c0_i32_0 : i32, i32
  }
  func.func @transform_13(%arg0: i32) -> (i32, i32) {
    %c0_i32 = arith.constant 0 : i32
    %c0_i32_0 = arith.constant 0 : i32
    %c0_i32_1 = arith.constant 0 : i32
    return %c0_i32, %c0_i32_0 : i32, i32
  }
  func.func @transform_14(%arg0: i32) -> (i32, i32) {
    %c0_i32 = arith.constant 0 : i32
    %c0_i32_0 = arith.constant 0 : i32
    return %arg0, %c0_i32 : i32, i32
  }
}

</mosaic_0001>

<bundles_post_ra>
// kernel: tile.24
= control target key start
LH: loop header
LB: loop body
LE: loop exit
PB: predicated region body
PF: predicated region fallthrough
CT: control target
= control target key end

     0   :  { %vm68_vm0 = vcmask 1047556   ;;  %s167_s9 = smov 16   ;;  %s168_s10 = smov 8   ;;  %vm70_vm1 = vcmask 64512   ;;  %vm89_vm2 = vcmask 261312   ;;  %vm110_vm3 = vcmask 195712   ;;  %s259_s0 = inlined_call_operand.vmem [shape: f32[2,1,8,4,8], index: 0, kind: input, shape index: {}]   ;;  %s260_s1 = inlined_call_operand.vmem [shape: f32[16,32], index: 1, kind: output, shape index: {}]  }
   0x1   :  { %v152_v0 = vld [vmem:[%s259_s0 + $0x1c] sm:$0xf]  ;;  %v153_v1 = vld [vmem:[%s259_s0 + $0x18] sm:$0xf]  ;;  %v154_v2 = vld [vmem:[%s259_s0 + $0x14] sm:$0xf] }
   0x2   :  { %39 = vst [vmem:[#allocation0 + $0x38] sm:$0xf] %v152_v0  ;;  %v155_v3 = vld [vmem:[%s259_s0 + $0x10] sm:$0xf]  ;;  %v156_v4 = vld [vmem:[%s259_s0 + $0xc] sm:$0xf] }
   0x3   :  { %43 = vst [vmem:[#allocation0 + $0x30] sm:$0xf] %v153_v1  ;;  %v157_v5 = vld [vmem:[%s259_s0 + $0x8] sm:$0xf]  ;;  %v158_v6 = vld [vmem:[%s259_s0 + $0x4] sm:$0xf] }
   0x4   :  { %47 = vst [vmem:[#allocation0 + $0x28] sm:$0xf] %v154_v2  ;;  %v64_v7 = vld [vmem:[%s259_s0] sm:$0xf]  ;;  %v144_v8 = vld [vmem:[%s259_s0 + $0x3c] sm:$0xf] }
   0x5   :  { %51 = vst [vmem:[#allocation0 + $0x20] sm:$0xf] %v155_v3  ;;  %v145_v9 = vld [vmem:[%s259_s0 + $0x38] sm:$0xf]  ;;  %v146_v10 = vld [vmem:[%s259_s0 + $0x34] sm:$0xf] }
   0x6   :  { %55 = vst [vmem:[#allocation0 + $0x18] sm:$0xf] %v156_v4  ;;  %v147_v11 = vld [vmem:[%s259_s0 + $0x30] sm:$0xf]  ;;  %v148_v12 = vld [vmem:[%s259_s0 + $0x2c] sm:$0xf] }
   0x7   :  { %59 = vst [vmem:[#allocation0 + $0x10] sm:$0xf] %v157_v5  ;;  %v149_v13 = vld [vmem:[%s259_s0 + $0x28] sm:$0xf]  ;;  %v150_v15 = vld [vmem:[%s259_s0 + $0x24] sm:$0xf] }
   0x8   :  { %63 = vst [vmem:[#allocation0 + $0x8] sm:$0xf] %v158_v6  ;;  %v151_v17 = vld [vmem:[%s259_s0 + $0x20] sm:$0xf]  ;;  %s166_s0 = smov 24   ;;  %vm131_vm4 = vcmask 130112  }
   0x9   :  { %65 = vst [vmem:[#allocation0] sm:$0xf] %v64_v7 }
   0xa   :  { %7 = vst [vmem:[#allocation0 + $0x78] sm:$0xf] %v144_v8 }
   0xb   :  { %11 = vst [vmem:[#allocation0 + $0x70] sm:$0xf] %v145_v9 }
   0xc   :  { %v84_v14 = vld [vmem:[#allocation0 + $0x3] ss:$8 sm:$0xf0]   ;;  %15 = vst [vmem:[#allocation0 + $0x68] sm:$0xf] %v146_v10 }
   0xd   :  { %v105_v16 = vld [vmem:[#allocation0 + $0x2] ss:$8 sm:$0xf0]   ;;  %19 = vst [vmem:[#allocation0 + $0x60] sm:$0xf] %v147_v11 }
   0xe   :  { %23 = vst [vmem:[#allocation0 + $0x58] sm:$0xf] %v148_v12  ;;  %v126_v18 = vld [vmem:[#allocation0 + $0x1] ss:$8 sm:$0xf0]  }
   0xf   :  { %27 = vst [vmem:[#allocation0 + $0x50] sm:$0xf] %v149_v13  ;;  %v67_v35 = vld [vmem:[#allocation0] ss:$8 sm:$0xf0]  }
  0x10   :  { %v82_v19 = vld [vmem:[#allocation0 + $0x3] ss:$8 sm:$0xf]   ;;  %v103_v20 = vld [vmem:[#allocation0 + $0x2] ss:$8 sm:$0xf]  }
  0x11   :  { %v86_v21 = vsel %vm68_vm0, %v84_v14, %v82_v19  ;;  %v107_v22 = vsel %vm68_vm0, %v105_v16, %v103_v20  ;;  %v124_v23 = vld [vmem:[#allocation0 + $0x1] ss:$8 sm:$0xf]   ;;  %31 = vst [vmem:[#allocation0 + $0x48] sm:$0xf] %v150_v15 }
  0x12   :  { %87 = vrot.lane.b32.xlu0 %v86_v21, %s166_s0  ;;  %108 = vrot.lane.b32.xlu1 %v107_v22, %s167_s9  ;;  %v128_v24 = vsel %vm68_vm0, %v126_v18, %v124_v23  ;;  %35 = vst [vmem:[#allocation0 + $0x40] sm:$0xf] %v151_v17  ;;  %v66_v34 = vld [vmem:[#allocation0] ss:$8 sm:$0xf]  }
  0x13   :  { %129 = vrot.lane.b32.xlu2 %v128_v24, %s168_s10  ;;  %v69_v36 = vsel %vm68_vm0, %v67_v35, %v66_v34 }
  0x14   :  { %v94_v25 = vld [vmem:[#allocation0 + $0x43] ss:$8 sm:$0xf0]   ;;  %v115_v26 = vld [vmem:[#allocation0 + $0x42] ss:$8 sm:$0xf0]  }
  0x15   :  { %v136_v27 = vld [vmem:[#allocation0 + $0x41] ss:$8 sm:$0xf0]   ;;  %71 = vst.msk [vmem:[%s260_s1] sm:$0xff] %vm70_vm1, %v69_v36  }
  0x16   :  { %v75_v38 = vld [vmem:[#allocation0 + $0x40] ss:$8 sm:$0xf0]  }
  0x19   :  { %v92_v28 = vld [vmem:[#allocation0 + $0x43] ss:$8 sm:$0xf]   ;;  %v113_v29 = vld [vmem:[#allocation0 + $0x42] ss:$8 sm:$0xf]  }
  0x1a   :  { %v96_v30 = vsel %vm68_vm0, %v94_v25, %v92_v28  ;;  %v117_v31 = vsel %vm68_vm0, %v115_v26, %v113_v29  ;;  %v134_v32 = vld [vmem:[#allocation0 + $0x41] ss:$8 sm:$0xf]   ;;  %v73_v37 = vld [vmem:[#allocation0 + $0x40] ss:$8 sm:$0xf]  }
  0x1b   :  { %97 = vrot.lane.b32.xlu0 %v96_v30, %s166_s0  ;;  %118 = vrot.lane.b32.xlu1 %v117_v31, %s167_s9  ;;  %v138_v33 = vsel %vm68_vm0, %v136_v27, %v134_v32  ;;  %v77_v40 = vsel %vm68_vm0, %v75_v38, %v73_v37 }
  0x1c   :  { %139 = vrot.lane.b32.xlu2 %v138_v33, %s168_s10  ;;  %159 = vst.msk [vmem:[%s260_s1 + $0x8] sm:$0xff] %vm70_vm1, %v77_v40  }
  0x6d   :  { %v130_v39 = vpop.permute.xlu2 %129  }
  0x76   :  { %v140_v41 = vpop.permute.xlu2 %139  }
  0x84   :  { %v88_v42 = vpop.permute.xlu0 %87   ;;  %v109_v43 = vpop.permute.xlu1 %108  }
  0x85   :  { %90 = vst.msk [vmem:[%s260_s1] sm:$0xff] %vm89_vm2, %v88_v42  }
  0x86   :  { %111 = vst.msk [vmem:[%s260_s1] sm:$0xff] %vm110_vm3, %v109_v43  }
  0x87   :  { %132 = vst.msk [vmem:[%s260_s1] sm:$0xff] %vm131_vm4, %v130_v39  }
  0x8d   :  { %v98_v44 = vpop.permute.xlu0 %97   ;;  %v119_v45 = vpop.permute.xlu1 %118  }
  0x8e   :  { %160 = vst.msk [vmem:[%s260_s1 + $0x8] sm:$0xff] %vm89_vm2, %v98_v44  }
  0x8f   :  { %161 = vst.msk [vmem:[%s260_s1 + $0x8] sm:$0xff] %vm110_vm3, %v119_v45  }
  0x90   :  { %162 = vst.msk [vmem:[%s260_s1 + $0x8] sm:$0xff] %vm131_vm4, %v140_v41  }

// kernel: tile.34
= control target key start
LH: loop header
LB: loop body
LE: loop exit
PB: predicated region body
PF: predicated region fallthrough
CT: control target
= control target key end

     0   :  { %vm68_vm0 = vcmask 1047556   ;;  %vm70_vm1 = vcmask 64512   ;;  %vm89_vm2 = vcmask 130112   ;;  %s195_s0 = inlined_call_operand.vmem [shape: f32[2,1,8,2,8], index: 0, kind: input, shape index: {}]   ;;  %s196_s1 = inlined_call_operand.vmem [shape: f32[16,16], index: 1, kind: output, shape index: {}]  }
   0x1   :  { %v110_v0 = vld [vmem:[%s195_s0 + $0xe] sm:$0x3]  ;;  %v111_v1 = vld [vmem:[%s195_s0 + $0xc] sm:$0x3]  ;;  %v112_v2 = vld [vmem:[%s195_s0 + $0xa] sm:$0x3] }
   0x2   :  { %39 = vst [vmem:[#allocation0 + $0x38] sm:$0x3] %v110_v0  ;;  %v113_v3 = vld [vmem:[%s195_s0 + $0x8] sm:$0x3]  ;;  %v114_v4 = vld [vmem:[%s195_s0 + $0x6] sm:$0x3] }
   0x3   :  { %43 = vst [vmem:[#allocation0 + $0x30] sm:$0x3] %v111_v1  ;;  %v115_v5 = vld [vmem:[%s195_s0 + $0x4] sm:$0x3]  ;;  %v116_v6 = vld [vmem:[%s195_s0 + $0x2] sm:$0x3] }
   0x4   :  { %47 = vst [vmem:[#allocation0 + $0x28] sm:$0x3] %v112_v2  ;;  %v64_v7 = vld [vmem:[%s195_s0] sm:$0x3]  ;;  %v102_v8 = vld [vmem:[%s195_s0 + $0x1e] sm:$0x3] }
   0x5   :  { %51 = vst [vmem:[#allocation0 + $0x20] sm:$0x3] %v113_v3  ;;  %v103_v9 = vld [vmem:[%s195_s0 + $0x1c] sm:$0x3]  ;;  %v104_v10 = vld [vmem:[%s195_s0 + $0x1a] sm:$0x3] }
   0x6   :  { %55 = vst [vmem:[#allocation0 + $0x18] sm:$0x3] %v114_v4  ;;  %v105_v11 = vld [vmem:[%s195_s0 + $0x18] sm:$0x3]  ;;  %v106_v12 = vld [vmem:[%s195_s0 + $0x16] sm:$0x3] }
   0x7   :  { %59 = vst [vmem:[#allocation0 + $0x10] sm:$0x3] %v115_v5  ;;  %v107_v13 = vld [vmem:[%s195_s0 + $0x14] sm:$0x3]  ;;  %v108_v14 = vld [vmem:[%s195_s0 + $0x12] sm:$0x3] }
   0x8   :  { %63 = vst [vmem:[#allocation0 + $0x8] sm:$0x3] %v116_v6  ;;  %v109_v15 = vld [vmem:[%s195_s0 + $0x10] sm:$0x3]  ;;  %s120_s0 = smov 8  }
   0x9   :  { %65 = vst [vmem:[#allocation0] sm:$0x3] %v64_v7 }
   0xa   :  { %7 = vst [vmem:[#allocation0 + $0x78] sm:$0x3] %v102_v8 }
   0xb   :  { %11 = vst [vmem:[#allocation0 + $0x70] sm:$0x3] %v103_v9 }
   0xc   :  { %15 = vst [vmem:[#allocation0 + $0x68] sm:$0x3] %v104_v10  ;;  %v84_v16 = vld [vmem:[#allocation0 + $0x1] ss:$8 sm:$0xf0]  }
   0xd   :  { %19 = vst [vmem:[#allocation0 + $0x60] sm:$0x3] %v105_v11  ;;  %v67_v23 = vld [vmem:[#allocation0] ss:$8 sm:$0xf0]  }
   0xe   :  { %23 = vst [vmem:[#allocation0 + $0x58] sm:$0x3] %v106_v12 }
   0xf   :  { %27 = vst [vmem:[#allocation0 + $0x50] sm:$0x3] %v107_v13 }
  0x10   :  { %v82_v17 = vld [vmem:[#allocation0 + $0x1] ss:$8 sm:$0xf]   ;;  %31 = vst [vmem:[#allocation0 + $0x48] sm:$0x3] %v108_v14 }
  0x11   :  { %v86_v18 = vsel %vm68_vm0, %v84_v16, %v82_v17  ;;  %35 = vst [vmem:[#allocation0 + $0x40] sm:$0x3] %v109_v15  ;;  %v66_v22 = vld [vmem:[#allocation0] ss:$8 sm:$0xf]  }
  0x12   :  { %87 = vrot.lane.b32.xlu0 %v86_v18, %s120_s0  ;;  %v69_v24 = vsel %vm68_vm0, %v67_v23, %v66_v22 }
  0x13   :  { %71 = vst.msk [vmem:[%s196_s1] sm:$0xff] %vm70_vm1, %v69_v24  }
  0x14   :  { %v94_v19 = vld [vmem:[#allocation0 + $0x41] ss:$8 sm:$0xf0]   ;;  %v75_v26 = vld [vmem:[#allocation0 + $0x40] ss:$8 sm:$0xf0]  }
  0x18   :  { %v92_v20 = vld [vmem:[#allocation0 + $0x41] ss:$8 sm:$0xf]   ;;  %v73_v25 = vld [vmem:[#allocation0 + $0x40] ss:$8 sm:$0xf]  }
  0x19   :  { %v96_v21 = vsel %vm68_vm0, %v94_v19, %v92_v20  ;;  %v77_v27 = vsel %vm68_vm0, %v75_v26, %v73_v25 }
  0x1a   :  { %97 = vrot.lane.b32.xlu0 %v96_v21, %s120_s0  ;;  %117 = vst.msk [vmem:[%s196_s1 + $0x8] sm:$0xff] %vm70_vm1, %v77_v27  }
  0x84   :  { %v88_v28 = vpop.permute.xlu0 %87  }
  0x85   :  { %90 = vst.msk [vmem:[%s196_s1] sm:$0xff] %vm89_vm2, %v88_v28  }
  0x8c   :  { %v98_v29 = vpop.permute.xlu0 %97  }
  0x8d   :  { %118 = vst.msk [vmem:[%s196_s1 + $0x8] sm:$0xff] %vm89_vm2, %v98_v29  }

// kernel: boss_decoder_layer.1
= control target key start
LH: loop header
LB: loop body
LE: loop exit
PB: predicated region body
PF: predicated region fallthrough
CT: control target
= control target key end

     0   :  { %s2297_s0 = inlined_call_operand.vmem [shape: f32[16,32], index: 0, kind: input, shape index: {}]   ;;  %s2298_s1 = inlined_call_operand.vmem [shape: f32[16,32], index: 1, kind: input, shape index: {}]   ;;  %s2299_s2 = inlined_call_operand.vmem [shape: f32[16,32], index: 2, kind: input, shape index: {}]   ;;  %s2300_s3 = inlined_call_operand.vmem [shape: f32[16,16], index: 3, kind: input, shape index: {}]   ;;  %s2301_s4 = inlined_call_operand.vmem [shape: f32[16,16], index: 4, kind: input, shape index: {}]   ;;  %s2302_s5 = inlined_call_operand.vmem [shape: f32[1,32], index: 5, kind: input, shape index: {}]   ;;  %s2303_s6 = inlined_call_operand.vmem [shape: f32[32,196], index: 6, kind: input, shape index: {}]   ;;  %s2304_s7 = inlined_call_operand.vmem [shape: f32[1,16], index: 7, kind: input, shape index: {}]   ;;  %s2305_s8 = inlined_call_operand.vmem [shape: f32[32,32], index: 8, kind: input, shape index: {}]   ;;  %s2306_s9 = inlined_call_operand.vmem [shape: f32[32,32], index: 9, kind: input, shape index: {}]   ;;  %s2307_s10 = inlined_call_operand.vmem [shape: f32[1,8], index: 10, kind: input, shape index: {}]   ;;  %s2308_s11 = inlined_call_operand.vmem [shape: f32[1,32], index: 11, kind: input, shape index: {}]   ;;  %s2309_s12 = inlined_call_operand.vmem [shape: f32[32,128], index: 12, kind: input, shape index: {}]   ;;  %s2310_s13 = inlined_call_operand.vmem [shape: f32[64,32], index: 13, kind: input, shape index: {}]   ;;  %s2311_s14 = inlined_call_operand.hbm [shape: f32[16,32], index: 14, kind: output, shape index: {}]  }
   0x1   :  { %2319 = sst [smem:[#allocation9_spill]] %s2297_s0 }
   0x2   :  { %19 = vsyncpa [#allocation3], 0 }
   0x3   :  { %21 = vsyncpa [#allocation3 + $0x1], 0  ;;  %s1900_s29 = smov 0   ;;  %s1902_s30 = smov 0  }
   0x4   :  { %s1904_s15 = smov 0   ;;  %s1906_s16 = smov 0  }
   0x5 LB: > { %2320 = sst [smem:[#allocation5_spill]] %s1801_s15  ;;  %s1921_s17 = sadd.s32 4294967295, %s1805_s16   ;;  %s1805_s16 = sphi %s1906_s16, %s2336_s16   ;;  %s1801_s15 = sphi %s1904_s15, %s2338_s15   ;;  %s1797_s30 = sphi %s1902_s30, %s2340_s30   ;;  %s1793_s29 = sphi %s1900_s29, %s2339_s29  }
   0x6   : > { %s1590_s18 = sadd.s32 4294967294, %s1805_s16   ;;  %s1925_s19 = sadd.s32 1, %s1805_s16  }
   0x7   : > { %2321 = sst [smem:[#allocation6_spill]] %s1925_s19  ;;  %s353_s20 = sadd.s32 1, %s1801_s15 }
   0x8   : > { %s350_s21 = ssub.s32 %s1805_s16, %s1925_s19  ;;  %p363_p0 = scmp.ne.s32.totalorder %s1801_s15, %s1797_s30 }
   0x9   : > { %p351_p1 = scmp.eq.s32.totalorder %s350_s21, 0  ;;  %p364_p2 = scmp.eq.s32.totalorder %s1921_s17, 1 }
   0xa   : > { %p369_p3 = scmp.ne.s32.totalorder %s1797_s30, %s1793_s29  ;;  %p370_p4 = scmp.eq.s32.totalorder %s1590_s18, 1 }
   0xb   : > { %s1936_s22 = scalar_select %p351_p1, %s1801_s15, %s353_s20  }
   0xc   : > { %p1938_p5 = por %p364_p2, %p363_p0  ;;  %p1942_p6 = por %p370_p4, %p369_p3 }
   0xd   : > { %2322 = sst [smem:[#allocation7_spill]] %s1936_s22  ;;  %p1593_p7 = scmp.ge.s32.totalorder %s1805_s16, 1 }
   0xe   : > { %s2324_s24 = scalar_select %p1942_p6, 1, 0 }
   0xf   : > { %p450_p8 = scmp.lt.s32.totalorder %s1805_s16, 3 }
  0x10   : > { %2325 = sst [smem:[#allocation8_spill]] %s2324_s24 }
  0x11   : > { %p451_p9 = pnand %p1593_p7, %p450_p8 }
  0x12   : > { %p511_p10 = scmp.lt.s32.totalorder (!%p451_p9), %s1921_s17, 1  ;;  %s2326_s0 = sld [smem:[#allocation9_spill]] (!%p451_p9) }
  0x13   : > { %454 = sbr.rel (%p451_p9) target bundleno = 2819 (0xb03), region = 76  ;;  %s1808_s24 = smov (!%p451_p9), 80  }
  0x14   : > { %s1809_s27 = smov (!%p451_p9), 32   ;;  %s2316_s19 = smov (!%p451_p9), 64  }
  0x15   : > { %s1811_s21 = smov (!%p451_p9), 96  }
  0x18   : > { %s512_s25 = scalar_select %p511_p10, %s1921_s17, 1  ;;  %vm534_vm0 = vcmask 261120   ;;  %v1807_v3 = vmov 32.0   ;;  %v568_v7 = vld [vmem:[%s2303_s6 + $0x20] sm:$0xff]  ;;  %v570_v8 = vld [vmem:[%s2303_s6 + $0x30] sm:$0xff]  ;;  %v569_v9 = vld [vmem:[%s2303_s6 + $0x28] sm:$0xff]  ;;  %v672_v39 = vlaneseq }
  0x19   : > { %1692 = vrcp.f32 %v1807_v3  ;;  %v574_v10 = vpack.c.bf16 %v570_v8, %v568_v7  ;;  %v571_v11 = vld [vmem:[%s2303_s6 + $0x38] sm:$0xff]  ;;  %v564_v12 = vld [vmem:[%s2303_s6] sm:$0xff]  ;;  %v566_v13 = vld [vmem:[%s2303_s6 + $0x10] sm:$0xff]  ;;  %vm642_vm5 = vcmask 556544   ;;  %vm653_vm8 = vcmask 31744  }
  0x1a   : > { %s1950_s26 = sshll.u32 %s512_s25, 3  ;;  %v575_v14 = vpack.c.bf16 %v571_v11, %v569_v9  ;;  %v565_v15 = vld [vmem:[%s2303_s6 + $0x8] sm:$0xff]  ;;  %v567_v16 = vld [vmem:[%s2303_s6 + $0x18] sm:$0xff]  ;;  %v572_v18 = vpack.c.bf16 %v566_v13, %v564_v12  ;;  %v1688_v34 = vld [vmem:[%s2302_s5] ss:$0 sm:$0xff]  ;;  %v2008_v40 = vand.u32 127, %v672_v39 }
  0x1b   : > { %s1956_s18 = scalar_lea.vmem %s2326_s0, %s1950_s26  ;;  %585 = vmatpush.bf16.msra.mxu0 %v574_v10  ;;  %v573_v19 = vpack.c.bf16 %v567_v16, %v565_v15  ;;  %s530_s22 = scalar_lea.vmem %s2301_s4, %s1950_s26  ;;  %v1813_v7 = vmov 0.0   ;;  %vm727_vm10 = vcmask 64512  }
  0x1c   : > { %v532_v0 = vld [vmem:[%s1956_s18] sm:$0xff]  ;;  %598 = vmatpush.bf16.msra.mxu1 %v575_v14  ;;  %s522_s25 = scalar_lea.vmem %s2299_s2, %s1950_s26  ;;  %s526_s15 = scalar_lea.vmem %s2300_s3, %s1950_s26  ;;  %675 = vrot.lane.b32.xlu1 %v2008_v40, %s2316_s19 }
  0x1d   : > { %v533_v1 = vmul.f32 %v532_v0, %v532_v0  ;;  %v631_v21 = vld [vmem:[%s530_s22] sm:$0xff]  ;;  %s518_s28 = scalar_lea.vmem %s2298_s1, %s1950_s26  ;;  %s1814_s26 = smov 56  }
  0x1e   : > { %633 = vrot.lane.b32.xlu2 %v631_v21, %s1808_s24  ;;  %v614_v26 = vld [vmem:[%s522_s25] sm:$0xff]  ;;  %s1816_s25 = smov 120   ;;  %s1817_s0 = smov 48  }
  0x1f   : > { %v535_v2 = vsel %vm534_vm0, %v533_v1, 0.0  ;;  %v1693_v4 = vpop.eup %1692  ;;  %586 = vmatpush.bf16.msra.mxu0 %v572_v18  ;;  %v625_v28 = vld [vmem:[%s526_s15] sm:$0xff]  ;;  %s1812_s15 = smov 112   ;;  %s1823_s22 = smov 88  }
  0x20   : > { %536 = vadd.xlane.f32.xlu0 %v535_v2  ;;  %v539_v5 = vmul.f32 32.0, %v1693_v4  ;;  %vm543_vm1 = vweird.f32 %v1693_v4  ;;  %599 = vmatpush.bf16.msra.mxu1 %v573_v19  ;;  %v612_v61 = vld [vmem:[%s518_s28] sm:$0xff]  ;;  %s1818_s28 = smov 104  }
  0x22   : > { %v540_v6 = vsub.f32 1.0, %v539_v5 }
  0x24   : > { %v541_v17 = vmul.f32 %v1693_v4, %v540_v6 }
  0x26   : > { %v542_v20 = vadd.f32 %v1693_v4, %v541_v17  ;;  %616 = vrot.lane.b32.xlu2 %v614_v26, %s1809_s27  ;;  %v721_v17 = vshrl.u32 %v672_v39, 7 }
  0x28   : > { %v1988_v22 = vsel %vm543_vm1, %v1693_v4, %v542_v20  ;;  %vm2049_vm11 = vcmp.le.s32.totalorder %v2008_v40, %v721_v17  ;;  %vm724_vm12 = vcmp.le.s32.totalorder %v721_v17, %v2008_v40 }
  0x2e   : > { %627 = vrot.lane.b32.xlu2 %v625_v28, %s2316_s19 }
  0x78   : > { %v634_v41 = vpop.permute.xlu2 %633 }
  0x80   : > { %v617_v42 = vpop.permute.xlu2 %616 }
  0x88   : > { %v628_v60 = vpop.permute.xlu2 %627 }
  0x8e   : > { %v676_v50 = vpop.permute.xlu1 %675 }
  0x93   : > { %v537_v23 = vpop.xlane.xlu0 %536 }
  0x94   : > { %v545_v24 = vmul.f32 %v1988_v22, %v537_v23  ;;  %v1815_v23 = vmov 0  }
  0x96   : > { %v546_v25 = vadd.f32 1e-06, %v545_v24 }
  0x98   : > { %1694 = vrsqrt.f32 %v546_v25  ;;  %vm553_vm3 = vweird.f32 %v546_v25 }
  0x9e   : > { %v1695_v27 = vpop.eup %1694 }
  0x9f   : > { %v548_v29 = vmul.f32 %v1695_v27, %v546_v25  ;;  %vm554_vm2 = vweird.f32 %v1695_v27 }
  0xa0   : > { %vm555_vm4 = vmor %vm553_vm3, %vm554_vm2  ;;  %vm797_vm3 = vcmask 1043456  }
  0xa1   : > { %v549_v30 = vmul.f32 %v1695_v27, %v548_v29 }
  0xa3   : > { %v550_v31 = vmul.f32 0.5, %v549_v30 }
  0xa5   : > { %v551_v32 = vsub.f32 1.5, %v550_v31  ;;  %v1689_v31 = vld [vmem:[%s2304_s7] ss:$0 sm:$0xff] }
  0xa7   : > { %v552_v33 = vmul.f32 %v1695_v27, %v551_v32 }
  0xa9   : > { %v556_v35 = vsel %vm555_vm4, %v1695_v27, %v552_v33 }
  0xaa   : > { %v557_v36 = vmul.f32 %v556_v35, %v532_v0 }
  0xac   : > { %v562_v37 = vmul.f32 %v1688_v34, %v557_v36 }
  0xae   : > { %v563_v38 = vpack.c.bf16 %v562_v37, %v562_v37 }
  0xb0   : > { %1600 = vmatmul.msk.bf16.vlgmr.msra.gmra.mxu0 %vm534_vm0, %v563_v38  ;;  %1601 = vmatmul.msk.bf16.vlgmr.msra.gmra.mxu1 %vm534_vm0, %v563_v38 }
 0x12d   : > { %v2012_v43 = vpop.f32.mrf.mxu0  ;;  %v2014_v44 = vpop.f32.mrf.mxu1 }
 0x12e   : > { %v643_v45 = vsel %vm642_vm5, %v2014_v44, -inf  ;;  %v619_v46 = vmul.f32 %v617_v42, %v2012_v43  ;;  %v636_v47 = vmul.f32 %v634_v41, %v2012_v43  ;;  %v613_v63 = vmul.f32 %v612_v61, %v2012_v43 }
 0x12f   : > { %644 = vmax.xlane.f32.xlu0 %v643_v45  ;;  %v630_v9 = vmul.f32 %v628_v60, %v2012_v43  ;;  %v790_v61 = vpack.c.bf16 %v2012_v43, %v2012_v43 }
 0x130   : > { %621 = vrot.lane.b32.xlu2 %v619_v46, %s1811_s21 }
 0x135   : > { %v590_v48 = vpop.f32.mrf.mxu0  ;;  %v603_v49 = vpop.f32.mrf.mxu1 }
 0x18a   : > { %v622_v62 = vpop.permute.xlu2 %621 }
 0x18b   : > { %v624_v0 = vadd.f32 %v622_v62, %v613_v63 }
 0x18d   : > { %v2032_v1 = vpack.c.bf16 %v624_v0, %v624_v0 }
 0x1a2   : > { %v2021_v51 = vpop.xlane.xlu0 %644 }
 0x1a3   : > { %vm674_vm6 = vcmp.eq.f32.partialorder %v2014_v44, %v2021_v51 }
 0x1a4   : > { %v677_v52 = vsel %vm674_vm6, %v676_v50, 4  ;;  %vm984_vm6 = vcmask 195584  }
 0x1a5   : > { %v678_v53 = vsel %vm642_vm5, %v677_v52, 2147483647  ;;  %vm982_vm5 = vcmask 130048  }
 0x1a6   : > { %v680_v54 = vshra.s32 %v678_v53, 16  ;;  %v679_v56 = vand.u32 65535, %v678_v53 }
 0x1a8   : > { %v682_v55 = vcvt.s32.f32 %v680_v54  ;;  %v681_v58 = vcvt.s32.f32 %v679_v56 }
 0x1aa   : > { %683 = vmin.xlane.f32.xlu1 %v682_v55 }
 0x21d   : > { %v684_v57 = vpop.xlane.xlu1 %683 }
 0x21e   : > { %vm685_vm7 = vcmp.eq.f32.partialorder %v682_v55, %v684_v57  ;;  %v690_v2 = vcvt.f32.s32 %v684_v57 }
 0x21f   : > { %v686_v59 = vsel %vm685_vm7, %v681_v58, inf }
 0x220   : > { %687 = vmin.xlane.f32.xlu0 %v686_v59  ;;  %v691_v4 = vshll.u32 %v690_v2, 16 }
 0x234   : > { %638 = vrot.lane.b32.xlu0 %v636_v47, %s1812_s15 }
 0x23c   : > { %863 = vrot.lane.b32.xlu0 %v2032_v1, %s1812_s15 }
 0x293   : > { %v688_v3 = vpop.xlane.xlu0 %687 }
 0x294   : > { %v689_v5 = vcvt.f32.s32 %v688_v3 }
 0x296   : > { %v692_v6 = vadd.s32 %v691_v4, %v689_v5 }
 0x298   : > { %vm693_vm9 = vcmp.eq.s32.totalorder %v692_v6, %v2008_v40 }
 0x299   : > { %v1602_v8 = vsel %vm693_vm9, 1.0, %v1813_v7 }
 0x29a   : > { %1603 = vmatpush.xpose.msk.msra.mxu2 %vm653_vm8, %v1602_v8 }
 0x29d   : > { %1604 = vmatmul.msk.f32.vlgmr.msra.gmra.mxu2 %vm653_vm8, %v1602_v8 }
 0x2a6   : > { %v639_v10 = vpop.permute.xlu0 %638 }
 0x2a7   : > { %v641_v11 = vadd.f32 %v639_v10, %v630_v9 }
 0x2a9   : > { %v753_v12 = vpack.c.bf16 %v641_v11, %v641_v11 }
 0x2ab   : > { %755 = vrot.lane.b32.xlu2 %v753_v12, %s2316_s19 }
 0x2ae   : > { %v864_v18 = vpop.permute.xlu0 %863 }
 0x2b3   : > { %865 = vrot.lane.b32.xlu2 %v753_v12, %s1814_s26  ;;  %s1819_s26 = smov 24  }
 0x305   : > { %v756_v13 = vpop.permute.xlu2 %755 }
 0x306   : > { %v761_v14 = vsel %vm727_vm10, %v756_v13, 0 }
 0x307   : > { %770 = vmatpush.bf16.xpose.msra.mxu3 %v761_v14  ;;  %827 = vmatpush.bf16.xpose.msrb.mxu0 %v761_v14  ;;  %v1820_v14 = vmov 16.0  }
 0x30d   : > { %v866_v15 = vpop.permute.xlu2 %865 }
 0x30e   : > { %1605 = vmatmul.msk.bf16.vlgmr.msra.gmra.mxu3 %vm727_vm10, %v2032_v1  ;;  %v871_v16 = vsel %vm727_vm10, %v866_v15, 0 }
 0x30f   : > { %880 = vmatpush.bf16.xpose.msrb.mxu3 %v871_v16  ;;  %933 = vmatpush.bf16.xpose.msra.mxu0 %v871_v16 }
 0x31e   : > { %1609 = vmatmul.msk.bf16.vlgmr.msrb.gmra.mxu3 %vm727_vm10, %v864_v18 }
 0x320   : > { %v716_v20 = vpop.f32.mrf.mxu2 }
 0x321   : > { %vm719_vm13 = vcmp.gt.f32.partialorder %v716_v20, 0.5 }
 0x322   : > { %vm2056_vm14 = vmand %vm719_vm13, %vm2049_vm11 }
 0x323   : > { %vm725_vm15 = vmand %vm719_vm13, %vm724_vm12  ;;  %v726_v24 = vsel %vm2056_vm14, 1, %v1815_v23 }
 0x324   : > { %v741_v25 = vsel %vm725_vm15, 1, %v1815_v23  ;;  %v728_v26 = vsel %vm727_vm10, %v726_v24, 0 }
 0x325   : > { %v729_v27 = vand.u32 65535, %v728_v26  ;;  %v730_v28 = vshrl.u32 %v728_v26, 16  ;;  %v742_v32 = vsel %vm727_vm10, %v741_v25, 0 }
 0x326   : > { %v743_v33 = vrot.slane %v742_v32, 4 }
 0x327   : > { %v731_v29 = vcvt.s32.f32 %v729_v27  ;;  %v732_v30 = vcvt.s32.f32 %v730_v28 }
 0x328   : > { %v744_v34 = vadd.s32 %v743_v33, %v742_v32 }
 0x329   : > { %733 = vadd.xlane.f32.xlu1 %v731_v29  ;;  %735 = vadd.xlane.f32.xlu2 %v732_v30 }
 0x32a   : > { %v745_v36 = vrot.slane %v744_v34, 2 }
 0x32c   : > { %v746_v37 = vadd.s32 %v745_v36, %v744_v34 }
 0x32e   : > { %v747_v41 = vrot.slane %v746_v37, 1 }
 0x330   : > { %v748_v47 = vadd.s32 %v747_v41, %v746_v37 }
 0x341   : > { %815 = vrot.lane.b32.xlu2 %v2032_v1, %s1816_s25 }
 0x342   : > { %608 = vrot.lane.b32.xlu1 %v1689_v31, %s1817_s0 }
 0x391   : > { %v772_v35 = vpop.f32.mrf.mxu3 }
 0x392   : > { %v776_v53 = vmul.f32 0.35355338, %v772_v35 }
 0x399   : > { %v774_v38 = vpop.f32.mrf.mxu3 }
 0x39c   : > { %v734_v39 = vpop.xlane.xlu1 %733  ;;  %v736_v40 = vpop.xlane.xlu2 %735 }
 0x39d   : > { %v738_v42 = vcvt.f32.s32 %v736_v40  ;;  %v737_v45 = vcvt.f32.s32 %v734_v39 }
 0x39f   : > { %v739_v46 = vshll.u32 %v738_v42, 16 }
 0x3a1   : > { %v740_v48 = vadd.s32 %v739_v46, %v737_v45  ;;  %v882_v49 = vpop.f32.mrf.mxu3 }
 0x3a2   : > { %v886_v54 = vmul.f32 0.35355338, %v882_v49 }
 0x3a3   : > { %v749_v50 = vsub.s32 %v740_v48, %v748_v47 }
 0x3a4   : > { %v816_v52 = vpop.permute.xlu2 %815 }
 0x3a5   : > { %vm750_vm1 = vcmp.le.s32.totalorder %v749_v50, 4  ;;  %1607 = vmatmul.msk.bf16.vlgmr.msrb.gmra.mxu0 %vm727_vm10, %v816_v52 }
 0x3a6   : > { %vm2072_vm2 = vmand %vm2056_vm14, %vm750_vm1 }
 0x3a7   : > { %v777_v56 = vsel %vm2072_vm2, %v776_v53, -1e+30  ;;  %v887_v57 = vsel %vm2072_vm2, %v886_v54, -1e+30 }
 0x3a8   : > { %v778_v58 = vsel %vm727_vm10, %v777_v56, -inf  ;;  %v888_v59 = vsel %vm727_vm10, %v887_v57, -inf }
 0x3a9   : > { %779 = vmax.xlane.f32.xlu0 %v778_v58  ;;  %889 = vmax.xlane.f32.xlu1 %v888_v59  ;;  %v884_v60 = vpop.f32.mrf.mxu3 }
 0x3b4   : > { %v609_v62 = vpop.permute.xlu1 %608 }
 0x3b5   : > { %v611_v63 = vadd.f32 %v609_v62, %v2014_v44 }
 0x3b7   : > { %v1012_v0 = vand.u32 2147483647, %v611_v63  ;;  %v1016_v33 = vmin.f32 %v611_v63, 0.0  ;;  %v1614_v63 = vsel %vm2049_vm11, 1.0, %v1813_v7 }
 0x3b9   : > { %v1013_v4 = vsub.f32 0.0, %v1012_v0 }
 0x3bb   : > { %v1014_v9 = vmul.f32 1.442695, %v1013_v4 }
 0x3c2   : > { %921 = vrot.lane.b32.xlu1 %v2032_v1, %s1818_s28 }
 0x3ca   : > { %792 = vrot.lane.b32.xlu1 %v790_v61, %s1809_s27  ;;  %s1822_s27 = smov 8  }
 0x3d2   : > { %900 = vrot.lane.b32.xlu1 %v790_v61, %s1819_s26 }
 0x41c   : > { %v780_v2 = vpop.xlane.xlu0 %779  ;;  %v890_v3 = vpop.xlane.xlu1 %889 }
 0x41d   : > { %v781_v5 = vsub.f32 %v777_v56, %v780_v2  ;;  %v891_v8 = vsub.f32 %v887_v57, %v890_v3 }
 0x41f   : > { %v782_v6 = vmul.f32 1.442695, %v781_v5  ;;  %v892_v10 = vmul.f32 1.442695, %v891_v8 }
 0x421   : > { %1696 = vpow2.f32 %v782_v6 }
 0x422   : > { %v829_v1 = vpop.f32.mrf.mxu0  ;;  %1698 = vpow2.f32 %v1014_v9 }
 0x423   : > { %v833_v11 = vmul.f32 0.35355338, %v829_v1  ;;  %1700 = vrcp.f32 %v1820_v14 }
 0x424   : > { %1702 = vpow2.f32 %v892_v10 }
 0x425   : > { %v834_v12 = vsel %vm2072_vm2, %v833_v11, -1e+30 }
 0x426   : > { %v835_v13 = vsel %vm727_vm10, %v834_v12, -inf }
 0x427   : > { %v1697_v15 = vpop.eup %1696  ;;  %836 = vmax.xlane.f32.xlu2 %v835_v13 }
 0x428   : > { %v784_v16 = vsel %vm727_vm10, %v1697_v15, 0.0  ;;  %v1699_v18 = vpop.eup %1698 }
 0x429   : > { %785 = vadd.xlane.f32.xlu0 %v784_v16  ;;  %v1701_v20 = vpop.eup %1700  ;;  %v1017_v23 = vadd.f32 1.0, %v1699_v18 }
 0x42a   : > { %v831_v17 = vpop.f32.mrf.mxu0  ;;  %v1703_v21 = vpop.eup %1702  ;;  %v1022_v25 = vmul.f32 16.0, %v1701_v20  ;;  %vm1026_vm4 = vweird.f32 %v1701_v20 }
 0x42b   : > { %v894_v24 = vsel %vm727_vm10, %v1703_v21, 0.0  ;;  %1704 = vlog2.f32 %v1017_v23 }
 0x42c   : > { %v1023_v27 = vsub.f32 1.0, %v1022_v25 }
 0x42e   : > { %v1024_v29 = vmul.f32 %v1701_v20, %v1023_v27 }
 0x430   : > { %v1025_v32 = vadd.f32 %v1701_v20, %v1024_v29 }
 0x431   : > { %895 = vadd.xlane.f32.xlu0 %v894_v24  ;;  %v1705_v28 = vpop.eup %1704  ;;  %v1010_v24 = vmax.f32 %v2012_v43, 0.0 }
 0x432   : > { %v1019_v30 = vmul.f32 0.6931472, %v1705_v28  ;;  %v1027_v36 = vsel %vm1026_vm4, %v1701_v20, %v1025_v32 }
 0x434   : > { %v922_v26 = vpop.permute.xlu1 %921  ;;  %v1020_v35 = vsub.f32 %v1016_v33, %v1019_v30  ;;  %v1011_v30 = vmax.f32 %v2014_v44, 0.0 }
 0x435   : > { %1611 = vmatmul.msk.bf16.vlgmr.msra.gmra.mxu0 %vm727_vm10, %v922_v26 }
 0x436   : > { %v1028_v37 = vmul.f32 %v1027_v36, %v1020_v35 }
 0x43c   : > { %v793_v31 = vpop.permute.xlu1 %792 }
 0x43d   : > { %v799_v34 = vsel %vm797_vm3, %v793_v31, 0 }
 0x43e   : > { %808 = vmatpush.bf16.msrb.mxu2 %v799_v34  ;;  %857 = vmatpush.bf16.msrb.mxu1 %v799_v34 }
 0x444   : > { %v901_v38 = vpop.permute.xlu1 %900 }
 0x445   : > { %v906_v39 = vsel %vm797_vm3, %v901_v38, 0  ;;  %1032 = vrot.lane.b32.xlu0 %v1028_v37, %s1808_s24  ;;  %s2318_s24 = smov 16  }
 0x446   : > { %915 = vmatpush.bf16.msra.mxu2 %v906_v39  ;;  %963 = vmatpush.bf16.msra.mxu1 %v906_v39 }
 0x49a   : > { %v837_v40 = vpop.xlane.xlu2 %836 }
 0x49b   : > { %v838_v41 = vsub.f32 %v834_v12, %v837_v40 }
 0x49c   : > { %v786_v42 = vpop.xlane.xlu0 %785 }
 0x49d   : > { %v839_v45 = vmul.f32 1.442695, %v838_v41  ;;  %1706 = vrcp.f32 %v786_v42  ;;  %v1104_v41 = vpack.c.bf16 %v2014_v44, %v2014_v44  ;;  %v989_v42 = vld [vmem:[%s2305_s8 + $0x10] sm:$0xff] }
 0x49f   : > { %1708 = vpow2.f32 %v839_v45  ;;  %v990_v45 = vld [vmem:[%s2305_s8 + $0x18] sm:$0xff] }
 0x4a3   : > { %v1707_v46 = vpop.eup %1706 }
 0x4a4   : > { %v788_v47 = vmul.f32 %v1707_v46, %v1697_v15  ;;  %v896_v49 = vpop.xlane.xlu0 %895  ;;  %v992_v46 = vpack.c.bf16 %v990_v45, %v989_v42 }
 0x4a5   : > { %v1709_v48 = vpop.eup %1708  ;;  %1710 = vrcp.f32 %v896_v49  ;;  %v988_v49 = vld [vmem:[%s2305_s8 + $0x8] sm:$0xff] }
 0x4a6   : > { %v841_v50 = vsel %vm727_vm10, %v1709_v48, 0.0  ;;  %v789_v52 = vpack.c.bf16 %v788_v47, %v788_v47  ;;  %1002 = vmatpush.bf16.msra.mxu3 %v992_v46  ;;  %v1824_v46 = vmov 8.0  }
 0x4a7   : > { %842 = vadd.xlane.f32.xlu0 %v841_v50 }
 0x4a8   : > { %1606 = vmatmul.msk.bf16.vlgmr.msrb.gmra.mxu2 %vm727_vm10, %v789_v52 }
 0x4ab   : > { %v1711_v53 = vpop.eup %1710 }
 0x4ac   : > { %v898_v54 = vmul.f32 %v1711_v53, %v1703_v21 }
 0x4ae   : > { %v899_v59 = vpack.c.bf16 %v898_v54, %v898_v54 }
 0x4b2   : > { %v935_v56 = vpop.f32.mrf.mxu0 }
 0x4b3   : > { %v939_v57 = vmul.f32 0.35355338, %v935_v56 }
 0x4b5   : > { %v940_v58 = vsel %vm2072_vm2, %v939_v57, -1e+30 }
 0x4b6   : > { %v941_v60 = vsel %vm727_vm10, %v940_v58, -inf }
 0x4b7   : > { %v1033_v61 = vpop.permute.xlu0 %1032  ;;  %942 = vmax.xlane.f32.xlu1 %v941_v60 }
 0x4b8   : > { %1610 = vmatmul.msk.bf16.vlgmr.msra.gmra.mxu2 %vm727_vm10, %v899_v59 }
 0x4b9   : > { %1053 = vmatpush.msrb.mxu2 %v1033_v61 }
 0x4ba   : > { %v937_v62 = vpop.f32.mrf.mxu0 }
 0x4c8   : > { %1615 = vmatmul.msk.f32.vlgmr.msrb.gmra.mxu2 %vm727_vm10, %v1614_v63 }
 0x51a   : > { %v843_v0 = vpop.xlane.xlu0 %842 }
 0x51b   : > { %1712 = vrcp.f32 %v843_v0 }
 0x521   : > { %v1713_v2 = vpop.eup %1712 }
 0x522   : > { %v845_v55 = vmul.f32 %v1713_v2, %v1709_v48  ;;  %v987_v48 = vld [vmem:[%s2305_s8] sm:$0xff] }
 0x523   : > { %v991_v50 = vpack.c.bf16 %v988_v49, %v987_v48 }
 0x524   : > { %v846_v3 = vpack.c.bf16 %v845_v55, %v845_v55 }
 0x525   : > { %1003 = vmatpush.bf16.msra.mxu3 %v991_v50 }
 0x526   : > { %1608 = vmatmul.msk.bf16.vlgmr.msrb.gmra.mxu1 %vm727_vm10, %v846_v3 }
 0x52a   : > { %v943_v4 = vpop.xlane.xlu1 %942 }
 0x52b   : > { %v944_v5 = vsub.f32 %v940_v58, %v943_v4  ;;  %v2109_v6 = vpop.f32.mrf.mxu2 }
 0x52d   : > { %v945_v8 = vmul.f32 1.442695, %v944_v5 }
 0x52f   : > { %1714 = vpow2.f32 %v945_v8 }
 0x533   : > { %v812_v9 = vpop.f32.mrf.mxu2 }
 0x535   : > { %v1715_v1 = vpop.eup %1714 }
 0x536   : > { %v947_v10 = vsel %vm727_vm10, %v1715_v1, 0.0 }
 0x537   : > { %948 = vadd.xlane.f32.xlu2 %v947_v10 }
 0x53b   : > { %v917_v7 = vpop.f32.mrf.mxu2 }
 0x543   : > { %v919_v11 = vpop.f32.mrf.mxu2 }
 0x54b   : > { %v1055_v12 = vpop.f32.mrf.mxu2 }
 0x54c   : > { %v1058_v13 = vmul.f32 1.442695, %v1055_v12  ;;  %v1060_v14 = vsub.f32 0.0, %v1055_v12 }
 0x54e   : > { %1716 = vpow2.f32 %v1058_v13  ;;  %v1061_v15 = vmul.f32 1.442695, %v1060_v14 }
 0x550   : > { %1718 = vpow2.f32 %v1061_v15 }
 0x554   : > { %v1717_v16 = vpop.eup %1716 }
 0x555   : > { %1155 = vrot.lane.b32.xlu0 %v1717_v16, %s1816_s25  ;;  %1065 = vrot.lane.b32.xlu2 %v1717_v16, %s1812_s15  ;;  %v1281_v32 = vmul.f32 %v1717_v16, %v1011_v30 }
 0x556   : > { %v1719_v17 = vpop.eup %1718 }
 0x557   : > { %1071 = vrot.lane.b32.xlu1 %v1719_v17, %s2318_s24  ;;  %v1282_v33 = vmul.f32 0.35355338, %v1281_v32 }
 0x559   : > { %v1283_v34 = vpack.c.bf16 %v1282_v33, %v1282_v33 }
 0x5a3   : > { %v859_v18 = vpop.f32.mrf.mxu1 }
 0x5aa   : > { %v949_v20 = vpop.xlane.xlu2 %948 }
 0x5ab   : > { %1720 = vrcp.f32 %v949_v20  ;;  %v861_v21 = vpop.f32.mrf.mxu1 }
 0x5ac   : > { %1722 = vrcp.f32 %v1824_v46 }
 0x5b1   : > { %v1721_v23 = vpop.eup %1720 }
 0x5b2   : > { %v951_v25 = vmul.f32 %v1721_v23, %v1715_v1  ;;  %v1066_v26 = vpop.permute.xlu2 %1065 }
 0x5b3   : > { %v1068_v27 = vmul.f32 %v1066_v26, %v1010_v24 }
 0x5b4   : > { %v952_v28 = vpack.c.bf16 %v951_v25, %v951_v25 }
 0x5b5   : > { %v1069_v29 = vmul.f32 0.35355338, %v1068_v27 }
 0x5b6   : > { %1612 = vmatmul.msk.bf16.vlgmr.msra.gmra.mxu1 %vm727_vm10, %v952_v28 }
 0x5b7   : > { %v1075_v31 = vpack.c.bf16 %v1069_v29, %v1069_v29 }
 0x5b9   : > { %1078 = vrot.lane.b32.xlu2 %v1075_v31, %s2318_s24 }
 0x5c1   : > { %1285 = vrot.lane.b32.xlu2 %v1283_v34, %s1816_s25 }
 0x5c7   : > { %v1156_v35 = vpop.permute.xlu0 %1155 }
 0x5c8   : > { %v1158_v37 = vmul.f32 %v1156_v35, %v1010_v24  ;;  %v1216_v61 = vmul.f32 %v1156_v35, %v1011_v30 }
 0x5c9   : > { %v1072_v36 = vpop.permute.xlu1 %1071 }
 0x5ca   : > { %v1074_v43 = vmul.f32 %v1072_v36, %v1011_v30  ;;  %v1159_v39 = vmul.f32 0.35355338, %v1158_v37  ;;  %v1217_v63 = vmul.f32 0.35355338, %v1216_v61 }
 0x5cc   : > { %v1076_v38 = vpack.c.bf16 %v1074_v43, %v1074_v43  ;;  %v1160_v40 = vpack.c.bf16 %v1159_v39, %v1159_v39  ;;  %v1218_v0 = vpack.c.bf16 %v1217_v63, %v1217_v63 }
 0x5ce   : > { %1219 = vrot.lane.b32.xlu0 %v1076_v38, %s1818_s28  ;;  %1081 = vrot.lane.b32.xlu1 %v1076_v38, %s1812_s15 }
 0x5d6   : > { %974 = vrot.lane.b32.xlu0 %v917_v7, %s2318_s24  ;;  %1162 = vrot.lane.b32.xlu1 %v1160_v40, %s1822_s27  ;;  %s2333_s24 = smov 16  }
 0x5de   : > { %1242 = vrot.lane.b32.xlu0 %v1104_v41, %s1823_s22  ;;  %970 = vrot.lane.b32.xlu1 %v859_v18, %s1822_s27 }
 0x5e6   : > { %1106 = vrot.lane.b32.xlu1 %v1104_v41, %s1811_s21 }
 0x613   : > { %v1079_v58 = vpop.permute.xlu2 %1078 }
 0x61b   : > { %v1286_v55 = vpop.permute.xlu2 %1285 }
 0x633   : > { %v965_v47 = vpop.f32.mrf.mxu1 }
 0x634   : > { %978 = vrot.lane.b32.xlu2 %v965_v47, %s1819_s26  ;;  %v1723_v47 = vpop.eup %1722 }
 0x635   : > { %v1132_v48 = vmul.f32 8.0, %v1723_v47  ;;  %vm1136_vm7 = vweird.f32 %v1723_v47 }
 0x637   : > { %v1133_v49 = vsub.f32 1.0, %v1132_v48 }
 0x639   : > { %v1134_v50 = vmul.f32 %v1723_v47, %v1133_v49 }
 0x63b   : > { %v967_v52 = vpop.f32.mrf.mxu1 }
 0x63c   : > { %v1135_v52 = vadd.f32 %v1723_v47, %v1134_v50 }
 0x640   : > { %v1220_v53 = vpop.permute.xlu0 %1219  ;;  %v1082_v54 = vpop.permute.xlu1 %1081 }
 0x641   : > { %v1225_v56 = vsel %vm727_vm10, %v1220_v53, 0  ;;  %v1087_v57 = vsel %vm727_vm10, %v1082_v54, 0  ;;  %v1137_v53 = vsel %vm1136_vm7, %v1723_v47, %v1135_v52  ;;  %v1356_v47 = vld [vmem:[%s2306_s9 + $0x8] sm:$0xff] }
 0x642   : > { %1096 = vmatpush.bf16.xpose.msra.mxu2 %v1087_v57  ;;  %1174 = vmatpush.bf16.xpose.msrb.mxu1 %v1087_v57 }
 0x648   : > { %v1163_v59 = vpop.permute.xlu1 %1162  ;;  %v975_v60 = vpop.permute.xlu0 %974 }
 0x649   : > { %1616 = vmatmul.msk.bf16.vlgmr.msra.gmra.mxu2 %vm727_vm10, %v1079_v58  ;;  %1618 = vmatmul.msk.bf16.vlgmr.msrb.gmra.mxu1 %vm727_vm10, %v1163_v59 }
 0x64a   : > { %1234 = vmatpush.bf16.xpose.msrb.mxu2 %v1225_v56  ;;  %1297 = vmatpush.bf16.xpose.msra.mxu1 %v1225_v56 }
 0x650   : > { %v971_v62 = vpop.permute.xlu1 %970  ;;  %v1243_v2 = vpop.permute.xlu0 %1242 }
 0x651   : > { %v1248_v5 = vsel %vm797_vm3, %v1243_v2, 0  ;;  %v981_v8 = vsel %vm727_vm10, %v2109_v6, %v971_v62 }
 0x652   : > { %v983_v1 = vsel %vm982_vm5, %v981_v8, %v975_v60 }
 0x658   : > { %v1107_v3 = vpop.permute.xlu1 %1106 }
 0x659   : > { %v1112_v4 = vsel %vm797_vm3, %v1107_v3, 0  ;;  %1620 = vmatmul.msk.bf16.vlgmr.msrb.gmra.mxu2 %vm727_vm10, %v1218_v0  ;;  %1622 = vmatmul.msk.bf16.vlgmr.msra.gmra.mxu1 %vm727_vm10, %v1286_v55 }
 0x65a   : > { %1121 = vmatpush.bf16.msrb.mxu0 %v1112_v4  ;;  %1192 = vmatpush.bf16.msrb.mxu3 %v1112_v4 }
 0x65e   : > { %1257 = vmatpush.bf16.msra.mxu0 %v1248_v5 }
 0x68e   : > { %v979_v9 = vpop.permute.xlu2 %978 }
 0x68f   : > { %v985_v10 = vsel %vm984_vm6, %v983_v1, %v979_v9 }
 0x690   : > { %v986_v7 = vpack.c.bf16 %v985_v10, %v985_v10 }
 0x692   : > { %1613 = vmatmul.msk.bf16.vlgmr.msra.gmra.mxu3 %vm534_vm0, %v986_v7 }
 0x693   : > { %1315 = vmatpush.bf16.msra.mxu3 %v1248_v5 }
 0x6c6   : > { %v1176_v11 = vpop.f32.mrf.mxu1 }
 0x6c7   : > { %v1180_v12 = vsel %vm2049_vm11, %v1176_v11, 0.0  ;;  %v1690_v11 = vld [vmem:[%s2307_s10] ss:$0 sm:$0xff] }
 0x6c8   : > { %v1181_v13 = vpack.c.bf16 %v1180_v12, %v1180_v12 }
 0x6ca   : > { %1619 = vmatmul.msk.bf16.vlgmr.msrb.gmra.mxu3 %vm727_vm10, %v1181_v13 }
 0x6cc   : > { %v1098_v14 = vpop.f32.mrf.mxu2 }
 0x6cd   : > { %v1102_v6 = vsel %vm2049_vm11, %v1098_v14, 0.0 }
 0x6ce   : > { %v1103_v15 = vpack.c.bf16 %v1102_v6, %v1102_v6  ;;  %v1178_v16 = vpop.f32.mrf.mxu1 }
 0x6d0   : > { %1617 = vmatmul.msk.bf16.vlgmr.msrb.gmra.mxu0 %vm727_vm10, %v1103_v15 }
 0x6d4   : > { %v1100_v17 = vpop.f32.mrf.mxu2 }
 0x6d6   : > { %v1299_v18 = vpop.f32.mrf.mxu1 }
 0x6d7   : > { %v1303_v20 = vsel %vm2049_vm11, %v1299_v18, 0.0 }
 0x6d8   : > { %v1304_v21 = vpack.c.bf16 %v1303_v20, %v1303_v20 }
 0x6da   : > { %1623 = vmatmul.msk.bf16.vlgmr.msra.gmra.mxu3 %vm727_vm10, %v1304_v21 }
 0x6dc   : > { %v1236_v23 = vpop.f32.mrf.mxu2 }
 0x6dd   : > { %v1240_v24 = vsel %vm2049_vm11, %v1236_v23, 0.0 }
 0x6de   : > { %v1241_v25 = vpack.c.bf16 %v1240_v24, %v1240_v24  ;;  %v1301_v26 = vpop.f32.mrf.mxu1 }
 0x6e0   : > { %1621 = vmatmul.msk.bf16.vlgmr.msra.gmra.mxu0 %vm727_vm10, %v1241_v25 }
 0x6e4   : > { %v1238_v27 = vpop.f32.mrf.mxu2 }
 0x715   : > { %v2166_v28 = vpop.f32.mrf.mxu3 }
 0x71d   : > { %v1007_v29 = vpop.f32.mrf.mxu3 }
 0x74d   : > { %v2168_v30 = vpop.f32.mrf.mxu0  ;;  %v1194_v31 = vpop.f32.mrf.mxu3 }
 0x74e   : > { %v1198_v32 = vmul.f32 %v1194_v31, %v1194_v31  ;;  %v1127_v34 = vmul.f32 %v2168_v30, %v2168_v30 }
 0x750   : > { %v1199_v33 = vsel %vm727_vm10, %v1198_v32, 0.0  ;;  %v1128_v36 = vsel %vm727_vm10, %v1127_v34, 0.0 }
 0x751   : > { %1200 = vadd.xlane.f32.xlu2 %v1199_v33 }
 0x755   : > { %v1125_v19 = vpop.f32.mrf.mxu0  ;;  %v1196_v35 = vpop.f32.mrf.mxu3 }
 0x756   : > { %v646_v35 = vsub.f32 %v2014_v44, %v2021_v51  ;;  %v1357_v44 = vld [vmem:[%s2306_s9 + $0x10] sm:$0xff]  ;;  %v1358_v51 = vld [vmem:[%s2306_s9 + $0x18] sm:$0xff] }
 0x759   : > { %1129 = vadd.xlane.f32.xlu2 %v1128_v36 }
 0x75d   : > { %v2174_v43 = vpop.f32.mrf.mxu0  ;;  %v2176_v37 = vpop.f32.mrf.mxu3 }
 0x75e   : > { %v1263_v38 = vmul.f32 %v2174_v43, %v2174_v43  ;;  %v1321_v39 = vmul.f32 %v2176_v37, %v2176_v37 }
 0x760   : > { %v1322_v40 = vsel %vm727_vm10, %v1321_v39, 0.0  ;;  %v1264_v41 = vsel %vm727_vm10, %v1263_v38, 0.0 }
 0x761   : > { %1323 = vadd.xlane.f32.xlu0 %v1322_v40  ;;  %1265 = vadd.xlane.f32.xlu1 %v1264_v41  ;;  %v647_v41 = vmul.f32 1.442695, %v646_v35  ;;  %v1442_v35 = vld [vmem:[%s2310_s13 + $0x30] sm:$0xff] }
 0x765   : > { %v1261_v42 = vpop.f32.mrf.mxu0  ;;  %v1319_v45 = vpop.f32.mrf.mxu3 }
 0x7c4   : > { %v1201_v54 = vpop.xlane.xlu2 %1200 }
 0x7c5   : > { %v1202_v56 = vmul.f32 %v1201_v54, %v1137_v53 }
 0x7c7   : > { %v1203_v57 = vadd.f32 1e-06, %v1202_v56 }
 0x7c9   : > { %1724 = vrsqrt.f32 %v1203_v57  ;;  %vm1210_vm11 = vweird.f32 %v1203_v57 }
 0x7cc   : > { %v1130_v58 = vpop.xlane.xlu2 %1129 }
 0x7cd   : > { %v1138_v59 = vmul.f32 %v1137_v53, %v1130_v58 }
 0x7cf   : > { %v1725_v60 = vpop.eup %1724  ;;  %v1139_v61 = vadd.f32 1e-06, %v1138_v59 }
 0x7d0   : > { %v1205_v62 = vmul.f32 %v1725_v60, %v1203_v57  ;;  %vm1211_vm9 = vweird.f32 %v1725_v60 }
 0x7d1   : > { %1726 = vrsqrt.f32 %v1139_v61  ;;  %vm1212_vm12 = vmor %vm1210_vm11, %vm1211_vm9  ;;  %vm1146_vm14 = vweird.f32 %v1139_v61 }
 0x7d2   : > { %v1206_v63 = vmul.f32 %v1725_v60, %v1205_v62 }
 0x7d4   : > { %v1207_v0 = vmul.f32 0.5, %v1206_v63  ;;  %v1324_v2 = vpop.xlane.xlu0 %1323  ;;  %v1266_v55 = vpop.xlane.xlu1 %1265 }
 0x7d5   : > { %v1325_v3 = vmul.f32 %v1324_v2, %v1137_v53  ;;  %v1267_v4 = vmul.f32 %v1266_v55, %v1137_v53 }
 0x7d6   : > { %v1208_v5 = vsub.f32 1.5, %v1207_v0 }
 0x7d7   : > { %v1727_v8 = vpop.eup %1726  ;;  %v1326_v9 = vadd.f32 1e-06, %v1325_v3  ;;  %v1268_v1 = vadd.f32 1e-06, %v1267_v4 }
 0x7d8   : > { %v1209_v10 = vmul.f32 %v1725_v60, %v1208_v5  ;;  %v1141_v7 = vmul.f32 %v1727_v8, %v1139_v61  ;;  %vm1147_vm13 = vweird.f32 %v1727_v8 }
 0x7d9   : > { %1728 = vrsqrt.f32 %v1326_v9  ;;  %vm1148_vm15 = vmor %vm1146_vm14, %vm1147_vm13  ;;  %vm1333_vm3 = vweird.f32 %v1326_v9  ;;  %vm1275_vm7 = vweird.f32 %v1268_v1  ;;  %vm1448_vm14 = vcmask 523264  }
 0x7da   : > { %v1142_v12 = vmul.f32 %v1727_v8, %v1141_v7  ;;  %1730 = vrsqrt.f32 %v1268_v1  ;;  %v1213_v13 = vsel %vm1212_vm12, %v1725_v60, %v1209_v10  ;;  %v1742_v10 = vld [vmem:[%s1956_s18] sm:$0xff]  ;;  %s1628_s18 = sshll.u32 %s1921_s17, 3 }
 0x7db   : > { %v1214_v14 = vmul.f32 %v1213_v13, %v1194_v31  ;;  %1732 = vpow2.f32 %v647_v41  ;;  %v1438_v41 = vld [vmem:[%s2310_s13 + $0x10] sm:$0xff]  ;;  %s1478_s22 = scalar_lea.hbm %s2311_s14, %s1628_s18 }
 0x7dc   : > { %v1143_v6 = vmul.f32 0.5, %v1142_v12  ;;  %s1482_s21 = sshll.u32 %s1478_s22, 4  ;;  %s1483_s21 = int_to_ptr.hbm [resolvable:$true] %s1482_s21 }
 0x7dd   : > { %v1215_v15 = vmul.f32 %v1690_v11, %v1214_v14  ;;  %s1757_s20 = sshra.s32 %s1483_s21, 4  ;;  %s1758_s20 = int_to_ptr.hbm [resolvable:$true] %s1757_s20 }
 0x7de   : > { %v1144_v16 = vsub.f32 1.5, %v1143_v6  ;;  %v1404_v6 = vld [vmem:[%s2309_s12 + $0x10] sm:$0xff]  ;;  %s1759_s17 = scalar_lea.hbm %s1758_s20, 8  ;;  %p1764_p0 = scmp.lt.s32.totalorder %s1758_s20, %s2311_s14 }
 0x7df   : > { %v1729_v17 = vpop.eup %1728  ;;  %1340 = vrot.lane.b32.xlu1 %v1215_v15, %s1822_s27  ;;  %s2334_s27 = smov 64   ;;  %v1405_v15 = vld [vmem:[%s2309_s12 + $0x18] sm:$0xff]  ;;  %p1760_p11 = scmp.ne.s32.totalorder %s1758_s20, %s1759_s17 }
 0x7e0   : > { %v1731_v18 = vpop.eup %1730  ;;  %v1145_v20 = vmul.f32 %v1727_v8, %v1144_v16  ;;  %v1328_v21 = vmul.f32 %v1729_v17, %v1326_v9  ;;  %vm1334_vm1 = vweird.f32 %v1729_v17  ;;  %v1402_v16 = vld [vmem:[%s2309_s12] sm:$0xff] }
 0x7e1   : > { %v1270_v23 = vmul.f32 %v1731_v18, %v1268_v1  ;;  %vm1276_vm2 = vweird.f32 %v1731_v18  ;;  %vm1335_vm4 = vmor %vm1333_vm3, %vm1334_vm1  ;;  %v1733_v46 = vpop.eup %1732  ;;  %p1761_p12 = pnand %p1760_p11, %p1938_p5 }
 0x7e2   : > { %v1149_v24 = vsel %vm1148_vm15, %v1727_v8, %v1145_v20  ;;  %v1329_v25 = vmul.f32 %v1729_v17, %v1328_v21  ;;  %vm1277_vm9 = vmor %vm1275_vm7, %vm1276_vm2 }
 0x7e3   : > { %v1271_v26 = vmul.f32 %v1731_v18, %v1270_v23  ;;  %v1150_v27 = vmul.f32 %v1149_v24, %v2168_v30  ;;  %p1762_p13 = pneg %p1761_p12 }
 0x7e4   : > { %v1330_v29 = vmul.f32 0.5, %v1329_v25 }
 0x7e5   : > { %v1272_v31 = vmul.f32 0.5, %v1271_v26  ;;  %v1154_v32 = vmul.f32 %v1690_v11, %v1150_v27 }
 0x7e6   : > { %v1331_v33 = vsub.f32 1.5, %v1330_v29 }
 0x7e7   : > { %v1273_v34 = vsub.f32 1.5, %v1272_v31 }
 0x7e8   : > { %v1332_v19 = vmul.f32 %v1729_v17, %v1331_v33 }
 0x7e9   : > { %v1274_v36 = vmul.f32 %v1731_v18, %v1273_v34 }
 0x7ea   : > { %v1336_v38 = vsel %vm1335_vm4, %v1729_v17, %v1332_v19  ;;  %v1403_v17 = vld [vmem:[%s2309_s12 + $0x8] sm:$0xff] }
 0x7eb   : > { %v1337_v39 = vmul.f32 %v1336_v38, %v2176_v37  ;;  %v1278_v30 = vsel %vm1277_vm9, %v1731_v18, %v1274_v36  ;;  %v1355_v37 = vld [vmem:[%s2306_s9] sm:$0xff]  ;;  %v1406_v18 = vpack.c.bf16 %v1403_v17, %v1402_v16  ;;  %v1443_v36 = vld [vmem:[%s2310_s13 + $0x38] sm:$0xff] }
 0x7ec   : > { %v1279_v40 = vmul.f32 %v1278_v30, %v2174_v43  ;;  %v1360_v43 = vpack.c.bf16 %v1358_v51, %v1357_v44  ;;  %v1359_v48 = vpack.c.bf16 %v1356_v47, %v1355_v37  ;;  %v1440_v38 = vld [vmem:[%s2310_s13 + $0x20] sm:$0xff]  ;;  %v1441_v30 = vld [vmem:[%s2310_s13 + $0x28] sm:$0xff] }
 0x7ed   : > { %v1338_v42 = vmul.f32 %v1690_v11, %v1337_v39  ;;  %v1447_v39 = vpack.c.bf16 %v1443_v36, %v1442_v35  ;;  %v1436_v51 = vld [vmem:[%s2310_s13] sm:$0xff] }
 0x7ee   : > { %v1280_v45 = vmul.f32 %v1690_v11, %v1279_v40  ;;  %1370 = vmatpush.bf16.msra.mxu2 %v1360_v43  ;;  %v1446_v40 = vpack.c.bf16 %v1441_v30, %v1440_v38  ;;  %v1437_v43 = vld [vmem:[%s2310_s13 + $0x8] sm:$0xff] }
 0x7ef   : > { %1348 = vrot.lane.b32.xlu2 %v1338_v42, %s1819_s26  ;;  %1456 = vmatpush.bf16.msrb.mxu1 %v1447_v39  ;;  %v1439_v42 = vld [vmem:[%s2310_s13 + $0x18] sm:$0xff]  ;;  %v1444_v47 = vpack.c.bf16 %v1437_v43, %v1436_v51 }
 0x7f0   : > { %1344 = vrot.lane.b32.xlu0 %v1280_v45, %s2333_s24  ;;  %v1445_v45 = vpack.c.bf16 %v1439_v42, %v1438_v41 }
 0x7f2   : > { %1371 = vmatpush.bf16.msra.mxu2 %v1359_v48 }
 0x7f3   : > { %1457 = vmatpush.bf16.msrb.mxu1 %v1446_v40 }
 0x7f7   : > { %1458 = vmatpush.bf16.msrb.mxu1 %v1445_v45 }
 0x7f8   : > { %650 = vrot.lane.b32.xlu0 %v1733_v46, %s2334_s27 }
 0x7fb   : > { %1459 = vmatpush.bf16.msrb.mxu1 %v1444_v47 }
 0x849   : > { %v1349_v53 = vpop.permute.xlu2 %1348 }
 0x851   : > { %v1341_v49 = vpop.permute.xlu1 %1340 }
 0x852   : > { %v1351_v50 = vsel %vm727_vm10, %v1154_v32, %v1341_v49  ;;  %v1691_v32 = vld [vmem:[%s2308_s11] ss:$0 sm:$0xff] }
 0x862   : > { %v1345_v52 = vpop.permute.xlu0 %1344 }
 0x863   : > { %v1352_v54 = vsel %vm982_vm5, %v1351_v50, %v1345_v52 }
 0x864   : > { %v1353_v56 = vsel %vm984_vm6, %v1352_v54, %v1349_v53 }
 0x865   : > { %v1354_v57 = vpack.c.bf16 %v1353_v56, %v1353_v56 }
 0x867   : > { %1624 = vmatmul.msk.bf16.vlgmr.msra.gmra.mxu2 %vm534_vm0, %v1354_v57 }
 0x86a   : > { %v651_v58 = vpop.permute.xlu0 %650 }
 0x86b   : > { %v654_v59 = vsel %vm653_vm8, %v651_v58, 0.0 }
 0x86c   : > { %655 = vadd.xlane.f32.xlu1 %v654_v59 }
 0x8df   : > { %v656_v60 = vpop.xlane.xlu1 %655 }
 0x8e0   : > { %1734 = vrcp.f32 %v656_v60  ;;  %v668_v0 = vand.u32 2147483648, %v656_v60  ;;  %v666_v3 = vand.u32 2147483647, %v656_v60  ;;  %vm662_vm5 = vweird.f32 %v656_v60 }
 0x8e2   : > { %v669_v5 = vor.u32 1.1754944e-38, %v668_v0  ;;  %vm667_vm11 = vcmp.eq.f32.partialorder %v666_v3, 8.507059e+37 }
 0x8e6   : > { %v1735_v61 = vpop.eup %1734 }
 0x8e7   : > { %v658_v62 = vmul.f32 %v1735_v61, %v656_v60  ;;  %vm663_vm10 = vweird.f32 %v1735_v61 }
 0x8e8   : > { %vm664_vm6 = vmor %vm662_vm5, %vm663_vm10 }
 0x8e9   : > { %v659_v63 = vsub.f32 1.0, %v658_v62 }
 0x8ea   : > { %v1373_v2 = vpop.f32.mrf.mxu2 }
 0x8eb   : > { %v660_v55 = vmul.f32 %v1735_v61, %v659_v63  ;;  %v1377_v7 = vadd.f32 %v1742_v10, %v1373_v2 }
 0x8ed   : > { %v661_v4 = vadd.f32 %v1735_v61, %v660_v55 }
 0x8ef   : > { %v665_v8 = vsel %vm664_vm6, %v1735_v61, %v661_v4 }
 0x8f0   : > { %v670_v9 = vsel %vm667_vm11, %v669_v5, %v665_v8 }
 0x8f1   : > { %v1009_v1 = vmul.f32 %v2166_v28, %v670_v9  ;;  %v1407_v28 = vpack.c.bf16 %v1405_v15, %v1404_v6 }
 0x8f2   : > { %v1375_v11 = vpop.f32.mrf.mxu2 }
 0x8f3   : > { %v2215_v12 = vadd.f32 %v1377_v7, %v1009_v1  ;;  %1417 = vmatpush.bf16.msrb.mxu0 %v1407_v28 }
 0x8f5   : > { %v1379_v13 = vmul.f32 %v2215_v12, %v2215_v12 }
 0x8f7   : > { %v1380_v14 = vsel %vm534_vm0, %v1379_v13, 0.0  ;;  %1418 = vmatpush.bf16.msrb.mxu0 %v1406_v18 }
 0x8f8   : > { %1381 = vadd.xlane.f32.xlu2 %v1380_v14 }
 0x96b   : > { %v1382_v20 = vpop.xlane.xlu2 %1381 }
 0x96c   : > { %v1383_v21 = vmul.f32 %v1382_v20, %v1988_v22 }
 0x96e   : > { %v1384_v23 = vadd.f32 1e-06, %v1383_v21 }
 0x970   : > { %1736 = vrsqrt.f32 %v1384_v23  ;;  %vm1391_vm12 = vweird.f32 %v1384_v23 }
 0x976   : > { %v1737_v24 = vpop.eup %1736 }
 0x977   : > { %v1386_v25 = vmul.f32 %v1737_v24, %v1384_v23  ;;  %vm1392_vm8 = vweird.f32 %v1737_v24 }
 0x978   : > { %vm1393_vm13 = vmor %vm1391_vm12, %vm1392_vm8 }
 0x979   : > { %v1387_v26 = vmul.f32 %v1737_v24, %v1386_v25 }
 0x97b   : > { %v1388_v27 = vmul.f32 0.5, %v1387_v26 }
 0x97d   : > { %v1389_v29 = vsub.f32 1.5, %v1388_v27 }
 0x97f   : > { %v1390_v31 = vmul.f32 %v1737_v24, %v1389_v29 }
 0x981   : > { %v1394_v33 = vsel %vm1393_vm13, %v1737_v24, %v1390_v31 }
 0x982   : > { %v1395_v34 = vmul.f32 %v1394_v33, %v2215_v12 }
 0x984   : > { %v1400_v19 = vmul.f32 %v1691_v32, %v1395_v34 }
 0x986   : > { %v1401_v22 = vpack.c.bf16 %v1400_v19, %v1400_v19 }
 0x988   : > { %1625 = vmatmul.msk.bf16.vlgmr.msrb.gmra.mxu0 %vm534_vm0, %v1401_v22 }
 0xa05   : > { %v1420_v46 = vpop.f32.mrf.mxu0 }
 0xa06   : > { %1431 = vrot.lane.b32.xlu0 %v1420_v46, %s2334_s27  ;;  %v1424_v37 = vsub.f32 0.0, %v1420_v46  ;;  %s508_s27 = sand.u32 1, %s1797_s30  }
 0xa07   : > { %s1594_s15 = sshll.u32 %s508_s27, 3  ;;  %s1468_s24 = scalar_lea.sflag [#allocation3], %s508_s27 }
 0xa08   : > { %v1425_v48 = vmul.f32 1.442695, %v1424_v37  ;;  %s510_s26 = scalar_lea.vmem [#allocation2], %s1594_s15  ;;  %s1763_s15 = scalar_lea.hbm %s2311_s14, 16 }
 0xa09   : > { %s1480_s19 = sshll.u32 %s510_s26, 4  ;;  %p1765_p1 = scmp.lt.s32.totalorder %s1763_s15, %s1759_s17  ;;  %s1481_s19 = int_to_ptr.vmem [resolvable:$true] %s1480_s19 }
 0xa0a   : > { %1738 = vpow2.f32 %v1425_v48 }
 0xa0b   : > { %p1766_p2 = por %p1765_p1, %p1764_p0 }
 0xa0d   : > { %v1422_v44 = vpop.f32.mrf.mxu0  ;;  %p1767_p3 = pnand %p1766_p2, %p1762_p13 }
 0xa10   : > { %v1739_v49 = vpop.eup %1738 }
 0xa11   : > { %v1427_v50 = vadd.f32 1.0, %v1739_v49 }
 0xa13   : > { %1740 = vrcp.f32 %v1427_v50 }
 0xa19   : > { %v1741_v52 = vpop.eup %1740 }
 0xa1a   : > { %v1429_v53 = vmul.f32 %v1741_v52, %v1420_v46 }
 0xa78   : > { %v1432_v54 = vpop.permute.xlu0 %1431 }
 0xa79   : > { %v1434_v56 = vmul.f32 %v1432_v54, %v1429_v53 }
 0xa7b   : > { %v1435_v57 = vpack.c.bf16 %v1434_v56, %v1434_v56 }
 0xa7d   : > { %1626 = vmatmul.msk.bf16.vlgmr.msrb.gmra.mxu1 %vm1448_vm14, %v1435_v57 }
 0xafa   : > { %v1461_v58 = vpop.f32.mrf.mxu1 }
 0xafb   : > { %v1465_v59 = vadd.f32 %v1461_v58, %v2215_v12 }
 0xafd   : > { %1466 = vst.msk [vmem:[%s510_s26] sm:$0xff] %vm534_vm0, %v1465_v59 }
 0xafe   : > { %1770 = shalt.err (!%p1767_p3)
}
 0xaff   : > { %1631 = dma.vmem_to_hbm [thread:$0]  (%p1938_p5), %s1481_s19, 128, %s1483_s21, %s1468_s24  }
 0xb02   : > { %v1463_v60 = vpop.f32.mrf.mxu1 }
 0xb03 PF: > { %p1637_p4 = scmp.ge.s32.totalorder %s1805_s16, 2  ;;  %s1494_s22 = sand.u32 1, %s1793_s29  }
 0xb04   : > { %s1495_s26 = scalar_lea.sflag [#allocation3], %s1494_s22 }
 0xb05   : > { %p1634_p7 = pnand %p1637_p4, %p1942_p6 }
 0xb07   : > { %p1635_p8 = pneg %p1634_p7 }
 0xb09   : > { %1788 = dma.done.wait (%p1635_p8), %s1495_s26, 128  }
 0xb0a   : > { %1790 = vsyncadd (%p1635_p8), %s1495_s26, 4294967168  ;;  %s2336_s16 = sld [smem:[#allocation6_spill]]  ;;  %s2339_s29 = smov %s1797_s30 }
 0xb0b   : > { %s2337_s20 = sld [smem:[#allocation5_spill]] }
 0xb0c   : > { %s2338_s15 = sld [smem:[#allocation7_spill]] }
 0xb10   : > { %p24_p9 = scmp.ge.s32.totalorder %s2336_s16, 4  }
 0xb11   : > { %s2340_s30 = smov %s2337_s20 }
 0xb12   :  { %26 = sbr.rel (!%p24_p9) target bundleno = 5 (0x5), region = 123 }
 0xb17   :  { %1501 = vsyncpa [#allocation3], 1 }
 0xb18   :  { %1503 = vsyncpa [#allocation3 + $0x1], 1 }

</bundles_post_ra>
